<compile_context>
chip_gen: v7x
topology: tpu7x:2x2x1
jax: 0.10.0
libtpu: 0.0.40
codegen_flags: <defaults>
</compile_context>

<pallas_src>
import jax
import jax.numpy as jnp
from jax.experimental import pallas as pl
from jax.experimental.pallas import tpu as pltpu

# ---- model hyper-params (match the PyTorch module, small demo sizes) ----
FILTER_SIZES = [1, 2, 3, 4, 5]
NUM_FILT = 128                                   # each entry of num_filters
N_CONVS = len(FILTER_SIZES)
TOTAL_TAPS = sum(FILTER_SIZES)                   # 15
TAP_OFFSETS = [sum(FILTER_SIZES[:i]) for i in range(N_CONVS)]   # [0,1,3,6,10]
FEATURE_DIM = NUM_FILT * N_CONVS                 # 640
HIDDEN = FEATURE_DIM // 2                        # 320
N_CLASSES = 2
LANE = 128                                       # lane-dense padded logits width

B = 2          # batch
L = 8          # sequence length
E = 32         # embed_dim
V = 50         # vocab_size


def textcnn_kernel(x_ref, wcat_ref, cb_ref, w1_ref, b1_ref, w2_ref, b2_ref, out_ref):
    """Whole batch in one invocation.

    x_ref  : (B*L, E)                     bf16 embedded tokens (batch-major rows)
    wcat_ref: (E, TOTAL_TAPS*NUM_FILT)    bf16 packed conv taps (no zero padding)
    cb_ref : (N_CONVS, NUM_FILT)          f32 conv biases
    w1_ref : (N_CONVS, NUM_FILT, HIDDEN)  bf16 FC1 split into per-filter 128-wide K slices
    b1_ref : (1, HIDDEN)                  f32
    w2_ref : (HIDDEN, LANE)               bf16 FC2, classes zero-padded to 128 lanes
    b2_ref : (1, LANE)                    f32
    out_ref: (B, LANE)                    f32 lane-dense logits slab
    """
    # One wide MXU matmul covering every filter tap and the whole batch:
    # M = B*L, K = E, N = TOTAL_TAPS*NUM_FILT. f32 accumulation.
    y = jnp.dot(x_ref[...], wcat_ref[...],
                preferred_element_type=jnp.float32)          # [B*L, 15*128] f32

    cb = cb_ref[...]                                         # [N_CONVS, NUM_FILT] f32
    row_id = jax.lax.broadcasted_iota(jnp.int32, (B, NUM_FILT), 0)

    h_acc = jnp.zeros((B, HIDDEN), jnp.float32)
    for fi, f in enumerate(FILTER_SIZES):
        T = L - f + 1                                        # valid conv length (static)
        c0 = TAP_OFFSETS[fi] * NUM_FILT
        pool = jnp.zeros((B, NUM_FILT), jnp.float32)
        for b in range(B):                                   # 8-row-aligned static slices of y
            r0 = b * L
            acc = y[r0:r0 + T, c0:c0 + NUM_FILT]
            for j in range(1, f):                            # shifted-add over taps (VPU)
                acc = acc + y[r0 + j:r0 + j + T,
                              c0 + j * NUM_FILT:c0 + (j + 1) * NUM_FILT]
            acc = jnp.maximum(acc + cb[fi:fi + 1, :], 0.0)   # bias + ReLU (f32)
            prow = jnp.max(acc, axis=0, keepdims=True)       # max over time -> [1, NUM_FILT]
            # place this batch's pooled row into the [B, NUM_FILT] pool (no concat/reshape)
            pool = jnp.where(row_id == b,
                             jnp.broadcast_to(prow, (B, NUM_FILT)), pool)
        # FC1 as a sum of per-filter partial matmuls (128-wide K slice, no lane concat).
        h_acc = h_acc + jnp.dot(pool.astype(jnp.bfloat16), w1_ref[fi],
                                preferred_element_type=jnp.float32)

    h = jnp.maximum(h_acc + b1_ref[...], 0.0)                # [B, HIDDEN] f32
    logits = jnp.dot(h.astype(jnp.bfloat16), w2_ref[...],
                     preferred_element_type=jnp.float32) + b2_ref[...]   # [B, LANE]
    out_ref[...] = logits                                    # lane-dense full-block store


def textcnn_forward(x_emb, conv_w_cat, conv_b, fc1_w, fc1_b, fc2_w, fc2_b):
    """x_emb: [B, L, E] float32. Returns logits [B, N_CLASSES]."""
    x2d = x_emb.reshape(B * L, E).astype(jnp.bfloat16)       # flatten batch into matmul M
    vmem = pl.BlockSpec(memory_space=pltpu.MemorySpace.VMEM)
    out = pl.pallas_call(
        textcnn_kernel,
        out_shape=jax.ShapeDtypeStruct((B, LANE), jnp.float32),
        in_specs=[vmem] * 7,
        out_specs=vmem,
    )(x2d, conv_w_cat, conv_b, fc1_w, fc1_b, fc2_w, fc2_b)
    return out[:, :N_CLASSES]


# ----------------------------- parameter construction -----------------------------

def make_params(key):
    """Canonical f32 parameters (used by the pure-JAX reference)."""
    ks = jax.random.split(key, 7)
    emb_w = jax.random.normal(ks[0], (V, E), jnp.float32) * (E ** -0.5)
    conv_ws = [jax.random.normal(jax.random.fold_in(ks[1], fi),
                                 (f, E, NUM_FILT), jnp.float32) * 0.05
               for fi, f in enumerate(FILTER_SIZES)]          # per filter: [f, E, NUM_FILT]
    conv_b = jax.random.normal(ks[2], (N_CONVS, NUM_FILT), jnp.float32) * 0.05
    fc1_w = jax.random.normal(ks[3], (FEATURE_DIM, HIDDEN), jnp.float32) * 0.05
    fc1_b = jax.random.normal(ks[4], (1, HIDDEN), jnp.float32) * 0.05
    fc2_w = jax.random.normal(ks[5], (HIDDEN, N_CLASSES), jnp.float32) * 0.05
    fc2_b = jax.random.normal(ks[6], (1, N_CLASSES), jnp.float32) * 0.05
    return emb_w, conv_ws, conv_b, fc1_w, fc1_b, fc2_w, fc2_b


def pack_params_for_kernel(conv_ws, conv_b, fc1_w, fc1_b, fc2_w, fc2_b):
    """Repack into the kernel layout: packed bf16 conv taps, per-filter FC1 slices,
    lane-padded FC2 (classes -> 128 lanes)."""
    # W_cat columns ordered (filter fi, tap j): [E, NUM_FILT] per tap, tightly packed.
    w_cat = jnp.concatenate(
        [w.transpose(1, 0, 2).reshape(E, w.shape[0] * NUM_FILT) for w in conv_ws],
        axis=1).astype(jnp.bfloat16)                          # [E, TOTAL_TAPS*NUM_FILT]
    w1 = fc1_w.reshape(N_CONVS, NUM_FILT, HIDDEN).astype(jnp.bfloat16)
    w2 = jnp.zeros((HIDDEN, LANE), jnp.float32).at[:, :N_CLASSES].set(fc2_w).astype(jnp.bfloat16)
    b2 = jnp.zeros((1, LANE), jnp.float32).at[:, :N_CLASSES].set(fc2_b)
    return w_cat, conv_b, w1, fc1_b, w2, b2


def reference_forward(x_emb, conv_ws, conv_b, fc1_w, fc1_b, fc2_w, fc2_b):
    """Pure-JAX f32 reference mirroring the PyTorch forward."""
    pools = []
    for fi, (f, w) in enumerate(zip(FILTER_SIZES, conv_ws)):
        T = L - f + 1
        acc = jnp.zeros((B, T, NUM_FILT), jnp.float32)
        for j in range(f):
            acc = acc + jnp.einsum("ble,en->bln", x_emb[:, j:j + T, :], w[j])
        acc = jnp.maximum(acc + conv_b[fi][None, None, :], 0.0)
        pools.append(jnp.max(acc, axis=1))
    feat = jnp.concatenate(pools, axis=1)
    h = jnp.maximum(feat @ fc1_w + fc1_b, 0.0)
    return h @ fc2_w + fc2_b


if __name__ == "__main__":
    key = jax.random.PRNGKey(0)
    k_ids, k_par = jax.random.split(key)

    emb_w, conv_ws, conv_b, fc1_w, fc1_b, fc2_w, fc2_b = make_params(k_par)

    token_ids = jax.random.randint(k_ids, (B, L), 0, V)       # 2-D int input path
    x_emb = jnp.take(emb_w, token_ids, axis=0)                # [B, L, E] (glue gather)

    packed = pack_params_for_kernel(conv_ws, conv_b, fc1_w, fc1_b, fc2_w, fc2_b)
    logits = textcnn_forward(x_emb, *packed)
    logits = jax.block_until_ready(logits)

    ref = reference_forward(x_emb, conv_ws, conv_b, fc1_w, fc1_b, fc2_w, fc2_b)
    assert logits.shape == (B, N_CLASSES)
    # bf16 MXU operands with f32 accumulation vs. full-f32 reference -> small tolerance.
    assert jnp.allclose(logits, ref, rtol=3e-2, atol=3e-2), (logits, ref)

    print("KERNEL_OK")
</pallas_src>

<mosaic_0001>
module attributes {stable_mosaic.version = 11 : i64} {
  func.func @textcnn_kernel(%arg0: memref<16x32xbf16, #tpu.memory_space<vmem>>, %arg1: memref<32x1920xbf16, #tpu.memory_space<vmem>>, %arg2: memref<5x128xf32, #tpu.memory_space<vmem>>, %arg3: memref<5x128x320xbf16, #tpu.memory_space<vmem>>, %arg4: memref<1x320xf32, #tpu.memory_space<vmem>>, %arg5: memref<320x128xbf16, #tpu.memory_space<vmem>>, %arg6: memref<1x128xf32, #tpu.memory_space<vmem>>, %arg7: memref<2x128xf32, #tpu.memory_space<vmem>>) attributes {dimension_semantics = [], scalar_prefetch = 0 : i64, scratch_operands = 0 : i64, tpu.core_type = #tpu.core_type<tc>} {
    %c0 = arith.constant 0 : index
    %c0_0 = arith.constant 0 : index
    %0 = vector.load %arg0[%c0, %c0_0] : memref<16x32xbf16, #tpu.memory_space<vmem>>, vector<16x32xbf16>
    %c0_1 = arith.constant 0 : index
    %c0_2 = arith.constant 0 : index
    %1 = vector.load %arg1[%c0_1, %c0_2] : memref<32x1920xbf16, #tpu.memory_space<vmem>>, vector<32x1920xbf16>
    %cst = arith.constant dense<0.000000e+00> : vector<16x1920xf32>
    %2 = tpu.matmul %0, %1, %cst {dimension_numbers = #tpu.dot_dimension_numbers<[1], [0], [0], [1], [0, 0, 1, 1], [], []>} : vector<16x32xbf16>, vector<32x1920xbf16>, vector<16x1920xf32> -> vector<16x1920xf32>
    %c0_3 = arith.constant 0 : index
    %c0_4 = arith.constant 0 : index
    %3 = vector.load %arg2[%c0_3, %c0_4] : memref<5x128xf32, #tpu.memory_space<vmem>>, vector<5x128xf32>
    %4 = tpu.iota {dimensions = array<i32: 0>} : vector<2x128xi32>
    %cst_5 = arith.constant 0.000000e+00 : f32
    %5 = vector.broadcast %cst_5 : f32 to vector<2x320xf32>
    %cst_6 = arith.constant 0.000000e+00 : f32
    %6 = vector.broadcast %cst_6 : f32 to vector<2x128xf32>
    %7 = vector.extract_strided_slice %2 {offsets = [0, 0], sizes = [8, 128], strides = [1, 1]} : vector<16x1920xf32> to vector<8x128xf32>
    %8 = vector.extract_strided_slice %3 {offsets = [0, 0], sizes = [1, 128], strides = [1, 1]} : vector<5x128xf32> to vector<1x128xf32>
    %9 = vector.broadcast %8 : vector<1x128xf32> to vector<8x128xf32>
    %10 = arith.addf %7, %9 : vector<8x128xf32>
    %cst_7 = arith.constant 0.000000e+00 : f32
    %11 = vector.broadcast %cst_7 : f32 to vector<8x128xf32>
    %12 = arith.maximumf %10, %11 : vector<8x128xf32>
    %cst_8 = arith.constant dense<0xFF800000> : vector<128xf32>
    %13 = vector.multi_reduction <maximumf>, %12, %cst_8 [0] : vector<8x128xf32> to vector<128xf32>
    %14 = vector.shape_cast %13 : vector<128xf32> to vector<1x128xf32>
    %c0_i32 = arith.constant 0 : i32
    %15 = vector.broadcast %c0_i32 : i32 to vector<2x128xi32>
    %16 = arith.cmpi eq, %4, %15 : vector<2x128xi32>
    %17 = vector.shape_cast %14 : vector<1x128xf32> to vector<1x128xf32>
    %18 = vector.broadcast %17 : vector<1x128xf32> to vector<2x128xf32>
    %19 = arith.select %16, %18, %6 : vector<2x128xi1>, vector<2x128xf32>
    %20 = vector.extract_strided_slice %2 {offsets = [8, 0], sizes = [8, 128], strides = [1, 1]} : vector<16x1920xf32> to vector<8x128xf32>
    %21 = vector.extract_strided_slice %3 {offsets = [0, 0], sizes = [1, 128], strides = [1, 1]} : vector<5x128xf32> to vector<1x128xf32>
    %22 = vector.broadcast %21 : vector<1x128xf32> to vector<8x128xf32>
    %23 = arith.addf %20, %22 : vector<8x128xf32>
    %cst_9 = arith.constant 0.000000e+00 : f32
    %24 = vector.broadcast %cst_9 : f32 to vector<8x128xf32>
    %25 = arith.maximumf %23, %24 : vector<8x128xf32>
    %cst_10 = arith.constant dense<0xFF800000> : vector<128xf32>
    %26 = vector.multi_reduction <maximumf>, %25, %cst_10 [0] : vector<8x128xf32> to vector<128xf32>
    %27 = vector.shape_cast %26 : vector<128xf32> to vector<1x128xf32>
    %c1_i32 = arith.constant 1 : i32
    %28 = vector.broadcast %c1_i32 : i32 to vector<2x128xi32>
    %29 = arith.cmpi eq, %4, %28 : vector<2x128xi32>
    %30 = vector.shape_cast %27 : vector<1x128xf32> to vector<1x128xf32>
    %31 = vector.broadcast %30 : vector<1x128xf32> to vector<2x128xf32>
    %32 = arith.select %29, %31, %19 : vector<2x128xi1>, vector<2x128xf32>
    %33 = arith.truncf %32 : vector<2x128xf32> to vector<2x128xbf16>
    %c0_11 = arith.constant 0 : index
    %c0_12 = arith.constant 0 : index
    %c0_13 = arith.constant 0 : index
    %34 = vector.load %arg3[%c0_11, %c0_12, %c0_13] : memref<5x128x320xbf16, #tpu.memory_space<vmem>>, vector<1x128x320xbf16>
    %35 = vector.shape_cast %34 : vector<1x128x320xbf16> to vector<128x320xbf16>
    %cst_14 = arith.constant dense<0.000000e+00> : vector<2x320xf32>
    %36 = tpu.matmul %33, %35, %cst_14 {dimension_numbers = #tpu.dot_dimension_numbers<[1], [0], [0], [1], [0, 0, 1, 1], [], []>} : vector<2x128xbf16>, vector<128x320xbf16>, vector<2x320xf32> -> vector<2x320xf32>
    %37 = arith.addf %5, %36 : vector<2x320xf32>
    %cst_15 = arith.constant 0.000000e+00 : f32
    %38 = vector.broadcast %cst_15 : f32 to vector<2x128xf32>
    %39 = vector.extract_strided_slice %2 {offsets = [0, 128], sizes = [7, 128], strides = [1, 1]} : vector<16x1920xf32> to vector<7x128xf32>
    %40 = vector.extract_strided_slice %2 {offsets = [1, 256], sizes = [7, 128], strides = [1, 1]} : vector<16x1920xf32> to vector<7x128xf32>
    %41 = arith.addf %39, %40 : vector<7x128xf32>
    %42 = vector.extract_strided_slice %3 {offsets = [1, 0], sizes = [1, 128], strides = [1, 1]} : vector<5x128xf32> to vector<1x128xf32>
    %43 = vector.broadcast %42 : vector<1x128xf32> to vector<7x128xf32>
    %44 = arith.addf %41, %43 : vector<7x128xf32>
    %cst_16 = arith.constant 0.000000e+00 : f32
    %45 = vector.broadcast %cst_16 : f32 to vector<7x128xf32>
    %46 = arith.maximumf %44, %45 : vector<7x128xf32>
    %cst_17 = arith.constant dense<0xFF800000> : vector<128xf32>
    %47 = vector.multi_reduction <maximumf>, %46, %cst_17 [0] : vector<7x128xf32> to vector<128xf32>
    %48 = vector.shape_cast %47 : vector<128xf32> to vector<1x128xf32>
    %c0_i32_18 = arith.constant 0 : i32
    %49 = vector.broadcast %c0_i32_18 : i32 to vector<2x128xi32>
    %50 = arith.cmpi eq, %4, %49 : vector<2x128xi32>
    %51 = vector.shape_cast %48 : vector<1x128xf32> to vector<1x128xf32>
    %52 = vector.broadcast %51 : vector<1x128xf32> to vector<2x128xf32>
    %53 = arith.select %50, %52, %38 : vector<2x128xi1>, vector<2x128xf32>
    %54 = vector.extract_strided_slice %2 {offsets = [8, 128], sizes = [7, 128], strides = [1, 1]} : vector<16x1920xf32> to vector<7x128xf32>
    %55 = vector.extract_strided_slice %2 {offsets = [9, 256], sizes = [7, 128], strides = [1, 1]} : vector<16x1920xf32> to vector<7x128xf32>
    %56 = arith.addf %54, %55 : vector<7x128xf32>
    %57 = vector.extract_strided_slice %3 {offsets = [1, 0], sizes = [1, 128], strides = [1, 1]} : vector<5x128xf32> to vector<1x128xf32>
    %58 = vector.broadcast %57 : vector<1x128xf32> to vector<7x128xf32>
    %59 = arith.addf %56, %58 : vector<7x128xf32>
    %cst_19 = arith.constant 0.000000e+00 : f32
    %60 = vector.broadcast %cst_19 : f32 to vector<7x128xf32>
    %61 = arith.maximumf %59, %60 : vector<7x128xf32>
    %cst_20 = arith.constant dense<0xFF800000> : vector<128xf32>
    %62 = vector.multi_reduction <maximumf>, %61, %cst_20 [0] : vector<7x128xf32> to vector<128xf32>
    %63 = vector.shape_cast %62 : vector<128xf32> to vector<1x128xf32>
    %c1_i32_21 = arith.constant 1 : i32
    %64 = vector.broadcast %c1_i32_21 : i32 to vector<2x128xi32>
    %65 = arith.cmpi eq, %4, %64 : vector<2x128xi32>
    %66 = vector.shape_cast %63 : vector<1x128xf32> to vector<1x128xf32>
    %67 = vector.broadcast %66 : vector<1x128xf32> to vector<2x128xf32>
    %68 = arith.select %65, %67, %53 : vector<2x128xi1>, vector<2x128xf32>
    %69 = arith.truncf %68 : vector<2x128xf32> to vector<2x128xbf16>
    %c1 = arith.constant 1 : index
    %c0_22 = arith.constant 0 : index
    %c0_23 = arith.constant 0 : index
    %70 = vector.load %arg3[%c1, %c0_22, %c0_23] : memref<5x128x320xbf16, #tpu.memory_space<vmem>>, vector<1x128x320xbf16>
    %71 = vector.shape_cast %70 : vector<1x128x320xbf16> to vector<128x320xbf16>
    %cst_24 = arith.constant dense<0.000000e+00> : vector<2x320xf32>
    %72 = tpu.matmul %69, %71, %cst_24 {dimension_numbers = #tpu.dot_dimension_numbers<[1], [0], [0], [1], [0, 0, 1, 1], [], []>} : vector<2x128xbf16>, vector<128x320xbf16>, vector<2x320xf32> -> vector<2x320xf32>
    %73 = arith.addf %37, %72 : vector<2x320xf32>
    %cst_25 = arith.constant 0.000000e+00 : f32
    %74 = vector.broadcast %cst_25 : f32 to vector<2x128xf32>
    %75 = vector.extract_strided_slice %2 {offsets = [0, 384], sizes = [6, 128], strides = [1, 1]} : vector<16x1920xf32> to vector<6x128xf32>
    %76 = vector.extract_strided_slice %2 {offsets = [1, 512], sizes = [6, 128], strides = [1, 1]} : vector<16x1920xf32> to vector<6x128xf32>
    %77 = arith.addf %75, %76 : vector<6x128xf32>
    %78 = vector.extract_strided_slice %2 {offsets = [2, 640], sizes = [6, 128], strides = [1, 1]} : vector<16x1920xf32> to vector<6x128xf32>
    %79 = arith.addf %77, %78 : vector<6x128xf32>
    %80 = vector.extract_strided_slice %3 {offsets = [2, 0], sizes = [1, 128], strides = [1, 1]} : vector<5x128xf32> to vector<1x128xf32>
    %81 = vector.broadcast %80 : vector<1x128xf32> to vector<6x128xf32>
    %82 = arith.addf %79, %81 : vector<6x128xf32>
    %cst_26 = arith.constant 0.000000e+00 : f32
    %83 = vector.broadcast %cst_26 : f32 to vector<6x128xf32>
    %84 = arith.maximumf %82, %83 : vector<6x128xf32>
    %cst_27 = arith.constant dense<0xFF800000> : vector<128xf32>
    %85 = vector.multi_reduction <maximumf>, %84, %cst_27 [0] : vector<6x128xf32> to vector<128xf32>
    %86 = vector.shape_cast %85 : vector<128xf32> to vector<1x128xf32>
    %c0_i32_28 = arith.constant 0 : i32
    %87 = vector.broadcast %c0_i32_28 : i32 to vector<2x128xi32>
    %88 = arith.cmpi eq, %4, %87 : vector<2x128xi32>
    %89 = vector.shape_cast %86 : vector<1x128xf32> to vector<1x128xf32>
    %90 = vector.broadcast %89 : vector<1x128xf32> to vector<2x128xf32>
    %91 = arith.select %88, %90, %74 : vector<2x128xi1>, vector<2x128xf32>
    %92 = vector.extract_strided_slice %2 {offsets = [8, 384], sizes = [6, 128], strides = [1, 1]} : vector<16x1920xf32> to vector<6x128xf32>
    %93 = vector.extract_strided_slice %2 {offsets = [9, 512], sizes = [6, 128], strides = [1, 1]} : vector<16x1920xf32> to vector<6x128xf32>
    %94 = arith.addf %92, %93 : vector<6x128xf32>
    %95 = vector.extract_strided_slice %2 {offsets = [10, 640], sizes = [6, 128], strides = [1, 1]} : vector<16x1920xf32> to vector<6x128xf32>
    %96 = arith.addf %94, %95 : vector<6x128xf32>
    %97 = vector.extract_strided_slice %3 {offsets = [2, 0], sizes = [1, 128], strides = [1, 1]} : vector<5x128xf32> to vector<1x128xf32>
    %98 = vector.broadcast %97 : vector<1x128xf32> to vector<6x128xf32>
    %99 = arith.addf %96, %98 : vector<6x128xf32>
    %cst_29 = arith.constant 0.000000e+00 : f32
    %100 = vector.broadcast %cst_29 : f32 to vector<6x128xf32>
    %101 = arith.maximumf %99, %100 : vector<6x128xf32>
    %cst_30 = arith.constant dense<0xFF800000> : vector<128xf32>
    %102 = vector.multi_reduction <maximumf>, %101, %cst_30 [0] : vector<6x128xf32> to vector<128xf32>
    %103 = vector.shape_cast %102 : vector<128xf32> to vector<1x128xf32>
    %c1_i32_31 = arith.constant 1 : i32
    %104 = vector.broadcast %c1_i32_31 : i32 to vector<2x128xi32>
    %105 = arith.cmpi eq, %4, %104 : vector<2x128xi32>
    %106 = vector.shape_cast %103 : vector<1x128xf32> to vector<1x128xf32>
    %107 = vector.broadcast %106 : vector<1x128xf32> to vector<2x128xf32>
    %108 = arith.select %105, %107, %91 : vector<2x128xi1>, vector<2x128xf32>
    %109 = arith.truncf %108 : vector<2x128xf32> to vector<2x128xbf16>
    %c2 = arith.constant 2 : index
    %c0_32 = arith.constant 0 : index
    %c0_33 = arith.constant 0 : index
    %110 = vector.load %arg3[%c2, %c0_32, %c0_33] : memref<5x128x320xbf16, #tpu.memory_space<vmem>>, vector<1x128x320xbf16>
    %111 = vector.shape_cast %110 : vector<1x128x320xbf16> to vector<128x320xbf16>
    %cst_34 = arith.constant dense<0.000000e+00> : vector<2x320xf32>
    %112 = tpu.matmul %109, %111, %cst_34 {dimension_numbers = #tpu.dot_dimension_numbers<[1], [0], [0], [1], [0, 0, 1, 1], [], []>} : vector<2x128xbf16>, vector<128x320xbf16>, vector<2x320xf32> -> vector<2x320xf32>
    %113 = arith.addf %73, %112 : vector<2x320xf32>
    %cst_35 = arith.constant 0.000000e+00 : f32
    %114 = vector.broadcast %cst_35 : f32 to vector<2x128xf32>
    %115 = vector.extract_strided_slice %2 {offsets = [0, 768], sizes = [5, 128], strides = [1, 1]} : vector<16x1920xf32> to vector<5x128xf32>
    %116 = vector.extract_strided_slice %2 {offsets = [1, 896], sizes = [5, 128], strides = [1, 1]} : vector<16x1920xf32> to vector<5x128xf32>
    %117 = arith.addf %115, %116 : vector<5x128xf32>
    %118 = vector.extract_strided_slice %2 {offsets = [2, 1024], sizes = [5, 128], strides = [1, 1]} : vector<16x1920xf32> to vector<5x128xf32>
    %119 = arith.addf %117, %118 : vector<5x128xf32>
    %120 = vector.extract_strided_slice %2 {offsets = [3, 1152], sizes = [5, 128], strides = [1, 1]} : vector<16x1920xf32> to vector<5x128xf32>
    %121 = arith.addf %119, %120 : vector<5x128xf32>
    %122 = vector.extract_strided_slice %3 {offsets = [3, 0], sizes = [1, 128], strides = [1, 1]} : vector<5x128xf32> to vector<1x128xf32>
    %123 = vector.broadcast %122 : vector<1x128xf32> to vector<5x128xf32>
    %124 = arith.addf %121, %123 : vector<5x128xf32>
    %cst_36 = arith.constant 0.000000e+00 : f32
    %125 = vector.broadcast %cst_36 : f32 to vector<5x128xf32>
    %126 = arith.maximumf %124, %125 : vector<5x128xf32>
    %cst_37 = arith.constant dense<0xFF800000> : vector<128xf32>
    %127 = vector.multi_reduction <maximumf>, %126, %cst_37 [0] : vector<5x128xf32> to vector<128xf32>
    %128 = vector.shape_cast %127 : vector<128xf32> to vector<1x128xf32>
    %c0_i32_38 = arith.constant 0 : i32
    %129 = vector.broadcast %c0_i32_38 : i32 to vector<2x128xi32>
    %130 = arith.cmpi eq, %4, %129 : vector<2x128xi32>
    %131 = vector.shape_cast %128 : vector<1x128xf32> to vector<1x128xf32>
    %132 = vector.broadcast %131 : vector<1x128xf32> to vector<2x128xf32>
    %133 = arith.select %130, %132, %114 : vector<2x128xi1>, vector<2x128xf32>
    %134 = vector.extract_strided_slice %2 {offsets = [8, 768], sizes = [5, 128], strides = [1, 1]} : vector<16x1920xf32> to vector<5x128xf32>
    %135 = vector.extract_strided_slice %2 {offsets = [9, 896], sizes = [5, 128], strides = [1, 1]} : vector<16x1920xf32> to vector<5x128xf32>
    %136 = arith.addf %134, %135 : vector<5x128xf32>
    %137 = vector.extract_strided_slice %2 {offsets = [10, 1024], sizes = [5, 128], strides = [1, 1]} : vector<16x1920xf32> to vector<5x128xf32>
    %138 = arith.addf %136, %137 : vector<5x128xf32>
    %139 = vector.extract_strided_slice %2 {offsets = [11, 1152], sizes = [5, 128], strides = [1, 1]} : vector<16x1920xf32> to vector<5x128xf32>
    %140 = arith.addf %138, %139 : vector<5x128xf32>
    %141 = vector.extract_strided_slice %3 {offsets = [3, 0], sizes = [1, 128], strides = [1, 1]} : vector<5x128xf32> to vector<1x128xf32>
    %142 = vector.broadcast %141 : vector<1x128xf32> to vector<5x128xf32>
    %143 = arith.addf %140, %142 : vector<5x128xf32>
    %cst_39 = arith.constant 0.000000e+00 : f32
    %144 = vector.broadcast %cst_39 : f32 to vector<5x128xf32>
    %145 = arith.maximumf %143, %144 : vector<5x128xf32>
    %cst_40 = arith.constant dense<0xFF800000> : vector<128xf32>
    %146 = vector.multi_reduction <maximumf>, %145, %cst_40 [0] : vector<5x128xf32> to vector<128xf32>
    %147 = vector.shape_cast %146 : vector<128xf32> to vector<1x128xf32>
    %c1_i32_41 = arith.constant 1 : i32
    %148 = vector.broadcast %c1_i32_41 : i32 to vector<2x128xi32>
    %149 = arith.cmpi eq, %4, %148 : vector<2x128xi32>
    %150 = vector.shape_cast %147 : vector<1x128xf32> to vector<1x128xf32>
    %151 = vector.broadcast %150 : vector<1x128xf32> to vector<2x128xf32>
    %152 = arith.select %149, %151, %133 : vector<2x128xi1>, vector<2x128xf32>
    %153 = arith.truncf %152 : vector<2x128xf32> to vector<2x128xbf16>
    %c3 = arith.constant 3 : index
    %c0_42 = arith.constant 0 : index
    %c0_43 = arith.constant 0 : index
    %154 = vector.load %arg3[%c3, %c0_42, %c0_43] : memref<5x128x320xbf16, #tpu.memory_space<vmem>>, vector<1x128x320xbf16>
    %155 = vector.shape_cast %154 : vector<1x128x320xbf16> to vector<128x320xbf16>
    %cst_44 = arith.constant dense<0.000000e+00> : vector<2x320xf32>
    %156 = tpu.matmul %153, %155, %cst_44 {dimension_numbers = #tpu.dot_dimension_numbers<[1], [0], [0], [1], [0, 0, 1, 1], [], []>} : vector<2x128xbf16>, vector<128x320xbf16>, vector<2x320xf32> -> vector<2x320xf32>
    %157 = arith.addf %113, %156 : vector<2x320xf32>
    %cst_45 = arith.constant 0.000000e+00 : f32
    %158 = vector.broadcast %cst_45 : f32 to vector<2x128xf32>
    %159 = vector.extract_strided_slice %2 {offsets = [0, 1280], sizes = [4, 128], strides = [1, 1]} : vector<16x1920xf32> to vector<4x128xf32>
    %160 = vector.extract_strided_slice %2 {offsets = [1, 1408], sizes = [4, 128], strides = [1, 1]} : vector<16x1920xf32> to vector<4x128xf32>
    %161 = arith.addf %159, %160 : vector<4x128xf32>
    %162 = vector.extract_strided_slice %2 {offsets = [2, 1536], sizes = [4, 128], strides = [1, 1]} : vector<16x1920xf32> to vector<4x128xf32>
    %163 = arith.addf %161, %162 : vector<4x128xf32>
    %164 = vector.extract_strided_slice %2 {offsets = [3, 1664], sizes = [4, 128], strides = [1, 1]} : vector<16x1920xf32> to vector<4x128xf32>
    %165 = arith.addf %163, %164 : vector<4x128xf32>
    %166 = vector.extract_strided_slice %2 {offsets = [4, 1792], sizes = [4, 128], strides = [1, 1]} : vector<16x1920xf32> to vector<4x128xf32>
    %167 = arith.addf %165, %166 : vector<4x128xf32>
    %168 = vector.extract_strided_slice %3 {offsets = [4, 0], sizes = [1, 128], strides = [1, 1]} : vector<5x128xf32> to vector<1x128xf32>
    %169 = vector.broadcast %168 : vector<1x128xf32> to vector<4x128xf32>
    %170 = arith.addf %167, %169 : vector<4x128xf32>
    %cst_46 = arith.constant 0.000000e+00 : f32
    %171 = vector.broadcast %cst_46 : f32 to vector<4x128xf32>
    %172 = arith.maximumf %170, %171 : vector<4x128xf32>
    %cst_47 = arith.constant dense<0xFF800000> : vector<128xf32>
    %173 = vector.multi_reduction <maximumf>, %172, %cst_47 [0] : vector<4x128xf32> to vector<128xf32>
    %174 = vector.shape_cast %173 : vector<128xf32> to vector<1x128xf32>
    %c0_i32_48 = arith.constant 0 : i32
    %175 = vector.broadcast %c0_i32_48 : i32 to vector<2x128xi32>
    %176 = arith.cmpi eq, %4, %175 : vector<2x128xi32>
    %177 = vector.shape_cast %174 : vector<1x128xf32> to vector<1x128xf32>
    %178 = vector.broadcast %177 : vector<1x128xf32> to vector<2x128xf32>
    %179 = arith.select %176, %178, %158 : vector<2x128xi1>, vector<2x128xf32>
    %180 = vector.extract_strided_slice %2 {offsets = [8, 1280], sizes = [4, 128], strides = [1, 1]} : vector<16x1920xf32> to vector<4x128xf32>
    %181 = vector.extract_strided_slice %2 {offsets = [9, 1408], sizes = [4, 128], strides = [1, 1]} : vector<16x1920xf32> to vector<4x128xf32>
    %182 = arith.addf %180, %181 : vector<4x128xf32>
    %183 = vector.extract_strided_slice %2 {offsets = [10, 1536], sizes = [4, 128], strides = [1, 1]} : vector<16x1920xf32> to vector<4x128xf32>
    %184 = arith.addf %182, %183 : vector<4x128xf32>
    %185 = vector.extract_strided_slice %2 {offsets = [11, 1664], sizes = [4, 128], strides = [1, 1]} : vector<16x1920xf32> to vector<4x128xf32>
    %186 = arith.addf %184, %185 : vector<4x128xf32>
    %187 = vector.extract_strided_slice %2 {offsets = [12, 1792], sizes = [4, 128], strides = [1, 1]} : vector<16x1920xf32> to vector<4x128xf32>
    %188 = arith.addf %186, %187 : vector<4x128xf32>
    %189 = vector.extract_strided_slice %3 {offsets = [4, 0], sizes = [1, 128], strides = [1, 1]} : vector<5x128xf32> to vector<1x128xf32>
    %190 = vector.broadcast %189 : vector<1x128xf32> to vector<4x128xf32>
    %191 = arith.addf %188, %190 : vector<4x128xf32>
    %cst_49 = arith.constant 0.000000e+00 : f32
    %192 = vector.broadcast %cst_49 : f32 to vector<4x128xf32>
    %193 = arith.maximumf %191, %192 : vector<4x128xf32>
    %cst_50 = arith.constant dense<0xFF800000> : vector<128xf32>
    %194 = vector.multi_reduction <maximumf>, %193, %cst_50 [0] : vector<4x128xf32> to vector<128xf32>
    %195 = vector.shape_cast %194 : vector<128xf32> to vector<1x128xf32>
    %c1_i32_51 = arith.constant 1 : i32
    %196 = vector.broadcast %c1_i32_51 : i32 to vector<2x128xi32>
    %197 = arith.cmpi eq, %4, %196 : vector<2x128xi32>
    %198 = vector.shape_cast %195 : vector<1x128xf32> to vector<1x128xf32>
    %199 = vector.broadcast %198 : vector<1x128xf32> to vector<2x128xf32>
    %200 = arith.select %197, %199, %179 : vector<2x128xi1>, vector<2x128xf32>
    %201 = arith.truncf %200 : vector<2x128xf32> to vector<2x128xbf16>
    %c4 = arith.constant 4 : index
    %c0_52 = arith.constant 0 : index
    %c0_53 = arith.constant 0 : index
    %202 = vector.load %arg3[%c4, %c0_52, %c0_53] : memref<5x128x320xbf16, #tpu.memory_space<vmem>>, vector<1x128x320xbf16>
    %203 = vector.shape_cast %202 : vector<1x128x320xbf16> to vector<128x320xbf16>
    %cst_54 = arith.constant dense<0.000000e+00> : vector<2x320xf32>
    %204 = tpu.matmul %201, %203, %cst_54 {dimension_numbers = #tpu.dot_dimension_numbers<[1], [0], [0], [1], [0, 0, 1, 1], [], []>} : vector<2x128xbf16>, vector<128x320xbf16>, vector<2x320xf32> -> vector<2x320xf32>
    %205 = arith.addf %157, %204 : vector<2x320xf32>
    %c0_55 = arith.constant 0 : index
    %c0_56 = arith.constant 0 : index
    %206 = vector.load %arg4[%c0_55, %c0_56] : memref<1x320xf32, #tpu.memory_space<vmem>>, vector<1x320xf32>
    %207 = vector.broadcast %206 : vector<1x320xf32> to vector<2x320xf32>
    %208 = arith.addf %205, %207 : vector<2x320xf32>
    %cst_57 = arith.constant 0.000000e+00 : f32
    %209 = vector.broadcast %cst_57 : f32 to vector<2x320xf32>
    %210 = arith.maximumf %208, %209 : vector<2x320xf32>
    %211 = arith.truncf %210 : vector<2x320xf32> to vector<2x320xbf16>
    %c0_58 = arith.constant 0 : index
    %c0_59 = arith.constant 0 : index
    %212 = vector.load %arg5[%c0_58, %c0_59] : memref<320x128xbf16, #tpu.memory_space<vmem>>, vector<320x128xbf16>
    %cst_60 = arith.constant dense<0.000000e+00> : vector<2x128xf32>
    %213 = tpu.matmul %211, %212, %cst_60 {dimension_numbers = #tpu.dot_dimension_numbers<[1], [0], [0], [1], [0, 0, 1, 1], [], []>} : vector<2x320xbf16>, vector<320x128xbf16>, vector<2x128xf32> -> vector<2x128xf32>
    %c0_61 = arith.constant 0 : index
    %c0_62 = arith.constant 0 : index
    %214 = vector.load %arg6[%c0_61, %c0_62] : memref<1x128xf32, #tpu.memory_space<vmem>>, vector<1x128xf32>
    %215 = vector.broadcast %214 : vector<1x128xf32> to vector<2x128xf32>
    %216 = arith.addf %213, %215 : vector<2x128xf32>
    %c0_63 = arith.constant 0 : index
    %c0_64 = arith.constant 0 : index
    %217 = vector.load %arg7[%c0_63, %c0_64] : memref<2x128xf32, #tpu.memory_space<vmem>>, vector<2x128xf32>
    tpu.vector_store %arg7[%c0_63, %c0_64], %216 {strides = array<i32>} : memref<2x128xf32, #tpu.memory_space<vmem>>, vector<2x128xf32>,
    return
  }
}

</mosaic_0001>

<bundles_post_ra>
// kernel: tpu_custom_call.1
= control target key start
LH: loop header
LB: loop body
LE: loop exit
PB: predicated region body
PF: predicated region fallthrough
CT: control target
= control target key end

     0   :  { %v3044_v2 = vmov 0   ;;  %vm219_vm0 = vcmask 261120   ;;  %v3045_v31 = vmov 0.0   ;;  %vm3046_vm1 = vmmov 0   ;;  %s3792_s0 = inlined_call_operand.vmem [shape: bf16[16,32], index: 0, kind: input, shape index: {}]   ;;  %s3793_s1 = inlined_call_operand.vmem [shape: bf16[32,1920], index: 1, kind: input, shape index: {}]   ;;  %s3794_s2 = inlined_call_operand.vmem [shape: f32[5,128], index: 2, kind: input, shape index: {}]   ;;  %s3795_s3 = inlined_call_operand.vmem [shape: bf16[5,128,320], index: 3, kind: input, shape index: {}]   ;;  %s3796_s4 = inlined_call_operand.vmem [shape: f32[1,320], index: 4, kind: input, shape index: {}]   ;;  %s3797_s5 = inlined_call_operand.vmem [shape: bf16[320,128], index: 5, kind: input, shape index: {}]   ;;  %s3798_s6 = inlined_call_operand.vmem [shape: f32[1,128], index: 6, kind: input, shape index: {}]   ;;  %s3799_s7 = inlined_call_operand.hbm [shape: f32[2,128], index: 7, kind: output, shape index: {}]  }
   0x1   :  { %v2795_v0 = vld [vmem:[%s3793_s1 + $0x4] ss:$60 sps:$4 sm:$0xff]   ;;  %255 = vmatprep.mubr.bf16.mxu1 %v3044_v2  ;;  %341 = vmatprep.mubr.bf16.mxu0 %v3044_v2  ;;  %v2798_v3 = vld [vmem:[%s3793_s1 + $0x7c] ss:$60 sps:$4 sm:$0xff]   ;;  %v2801_v5 = vld [vmem:[%s3793_s1 + $0x14] ss:$60 sps:$4 sm:$0xff]  }
   0x2   :  { %v2797_v1 = vld [vmem:[%s3793_s1] ss:$60 sps:$4 sm:$0xff]   ;;  %223 = vmatprep.subr.bf16.mxu1 %v2795_v0  ;;  %v2800_v4 = vld [vmem:[%s3793_s1 + $0x78] ss:$60 sps:$4 sm:$0xff]   ;;  %309 = vmatprep.subr.bf16.mxu0 %v2801_v5  ;;  %v2804_v7 = vld [vmem:[%s3793_s1 + $0x8] ss:$60 sps:$4 sm:$0xff]  }
   0x3   :  { %224 = vmatpush1.bf16.msra.mxu1 %v2797_v1  ;;  %v3108_v6 = vld [vmem:[%s3792_s0] sm:$0xff]   ;;  %v2806_v8 = vld [vmem:[%s3793_s1 + $0xc] ss:$60 sps:$4 sm:$0xff]   ;;  %v2816_v15 = vld [vmem:[%s3793_s1 + $0x1c] ss:$60 sps:$4 sm:$0xff]  }
   0x4   :  { %225 = vmatprep.subr.bf16.mxu1 %v2798_v3  ;;  %v2807_v9 = vld [vmem:[%s3793_s1 + $0x10] ss:$60 sps:$4 sm:$0xff]   ;;  %v2812_v11 = vld [vmem:[%s3793_s1 + $0x84] ss:$60 sps:$4 sm:$0xff]   ;;  %v2825_v17 = vld [vmem:[%s3793_s1 + $0x9c] ss:$60 sps:$4 sm:$0xff]  }
   0x5   :  { %v2808_v10 = vld [vmem:[%s3793_s1 + $0x8c] ss:$60 sps:$4 sm:$0xff]   ;;  %310 = vmatpush1.bf16.msra.mxu0 %v2807_v9  ;;  %v2810_v13 = vld [vmem:[%s3793_s1 + $0x80] ss:$60 sps:$4 sm:$0xff]   ;;  %v2814_v18 = vld [vmem:[%s3793_s1 + $0x18] ss:$60 sps:$4 sm:$0xff]  }
   0x6   :  { %v2813_v12 = vld [vmem:[%s3793_s1 + $0x88] ss:$60 sps:$4 sm:$0xff]   ;;  %311 = vmatprep.subr.bf16.mxu0 %v2808_v10  ;;  %v2817_v16 = vld [vmem:[%s3793_s1 + $0x20] ss:$60 sps:$4 sm:$0xff]   ;;  %v2822_v19 = vld [vmem:[%s3793_s1 + $0x94] ss:$60 sps:$4 sm:$0xff]  }
   0x7   :  { %226 = vmatpush1.bf16.msra.mxu1 %v2800_v4  ;;  %v2819_v14 = vld [vmem:[%s3793_s1 + $0x24] ss:$60 sps:$4 sm:$0xff]   ;;  %v2823_v20 = vld [vmem:[%s3793_s1 + $0x98] ss:$60 sps:$4 sm:$0xff]   ;;  %v2820_v22 = vld [vmem:[%s3793_s1 + $0x90] ss:$60 sps:$4 sm:$0xff]  }
   0x8   :  { %266 = vmatprep.subr.bf16.mxu1 %v2806_v8  ;;  %v2834_v21 = vld [vmem:[%s3793_s1 + $0x34] ss:$60 sps:$4 sm:$0xff]   ;;  %v2828_v23 = vld [vmem:[%s3793_s1 + $0x2c] ss:$60 sps:$4 sm:$0xff]   ;;  %v2831_v27 = vld [vmem:[%s3793_s1 + $0xa4] ss:$60 sps:$4 sm:$0xff]  }
   0x9   :  { %312 = vmatpush1.bf16.msra.mxu0 %v2813_v12  ;;  %v2832_v24 = vld [vmem:[%s3793_s1 + $0x30] ss:$60 sps:$4 sm:$0xff]   ;;  %v2826_v25 = vld [vmem:[%s3793_s1 + $0x28] ss:$60 sps:$4 sm:$0xff]   ;;  %v2829_v29 = vld [vmem:[%s3793_s1 + $0xa0] ss:$60 sps:$4 sm:$0xff]  }
   0xa   :  { %2318 = vmatmul.mubr.msk.bf16.vlgmr.msra.gmra.mrb[0].mxu1 %vm219_vm0, %v3108_v6  ;;  %395 = vmatprep.subr.bf16.mxu0 %v2819_v14  ;;  %v2837_v26 = vld [vmem:[%s3793_s1 + $0xac] ss:$60 sps:$4 sm:$0xff]   ;;  %v2838_v30 = vld [vmem:[%s3793_s1 + $0x38] ss:$60 sps:$4 sm:$0xff]  }
   0xb   :  { %267 = vmatpush1.bf16.msra.mxu1 %v2804_v7  ;;  %298 = vmatprep.mubr.bf16.mxu1 %v3044_v2  ;;  %v2835_v28 = vld [vmem:[%s3793_s1 + $0xa8] ss:$60 sps:$4 sm:$0xff]   ;;  %v2839_v32 = vld [vmem:[%s3793_s1 + $0xb0] ss:$60 sps:$4 sm:$0xff]  }
   0xc   :  { %268 = vmatprep.subr.bf16.mxu1 %v2812_v11  ;;  %2320 = vmatmul.mubr.msk.bf16.vlgmr.msra.gmra.mrb[0].mxu0 %vm219_vm0, %v3108_v6 }
   0xd   :  { %396 = vmatpush1.bf16.msra.mxu0 %v2817_v16  ;;  %427 = vmatprep.mubr.bf16.mxu0 %v3044_v2 }
   0xe   :  { %397 = vmatprep.subr.bf16.mxu0 %v2825_v17 }
   0xf   :  { %269 = vmatpush1.bf16.msra.mxu1 %v2810_v13 }
  0x10   :  { %352 = vmatprep.subr.bf16.mxu1 %v2816_v15 }
  0x11   :  { %398 = vmatpush1.bf16.msra.mxu0 %v2823_v20 }
  0x12   :  { %2319 = vmatmul.mubr.msk.bf16.vlgmr.msra.gmra.mrb[4].mxu1 %vm219_vm0, %v3108_v6  ;;  %481 = vmatprep.subr.bf16.mxu0 %v2834_v21 }
  0x13   :  { %353 = vmatpush1.bf16.msra.mxu1 %v2814_v18  ;;  %384 = vmatprep.mubr.bf16.mxu1 %v3044_v2 }
  0x14   :  { %354 = vmatprep.subr.bf16.mxu1 %v2822_v19  ;;  %2322 = vmatmul.mubr.msk.bf16.vlgmr.msra.gmra.mrb[4].mxu0 %vm219_vm0, %v3108_v6 }
  0x15   :  { %482 = vmatpush1.bf16.msra.mxu0 %v2832_v24  ;;  %513 = vmatprep.mubr.bf16.mxu0 %v3044_v2 }
  0x16   :  { %483 = vmatprep.subr.bf16.mxu0 %v2837_v26 }
  0x17   :  { %355 = vmatpush1.bf16.msra.mxu1 %v2820_v22 }
  0x18   :  { %438 = vmatprep.subr.bf16.mxu1 %v2828_v23 }
  0x19   :  { %484 = vmatpush1.bf16.msra.mxu0 %v2835_v28 }
  0x1a   :  { %2321 = vmatmul.mubr.msk.bf16.vlgmr.msra.gmra.mrb[8].mxu1 %vm219_vm0, %v3108_v6 }
  0x1b   :  { %439 = vmatpush1.bf16.msra.mxu1 %v2826_v25  ;;  %470 = vmatprep.mubr.bf16.mxu1 %v3044_v2 }
  0x1c   :  { %440 = vmatprep.subr.bf16.mxu1 %v2831_v27  ;;  %2324 = vmatmul.mubr.msk.bf16.vlgmr.msra.gmra.mrb[8].mxu0 %vm219_vm0, %v3108_v6 }
  0x1d   :  { %852 = vmatprep.mubr.bf16.mxu0 %v3044_v2 }
  0x1f   :  { %441 = vmatpush1.bf16.msra.mxu1 %v2829_v29 }
  0x20   :  { %2671 = vmatprep.subr.bf16.mxu1 %v3045_v31 }
  0x22   :  { %2323 = vmatmul.mubr.msk.bf16.vlgmr.msra.gmra.mrb[12].mxu1 %vm219_vm0, %v3108_v6 }
  0x23   :  { %2672 = vmatpush3.bf16.msra.mxu1 %v2838_v30  ;;  %2675 = vmatprep.mubr.msk.bf16.mxu1 %vm3046_vm1, %v3045_v31 }
  0x24   :  { %2673 = vmatprep.subr.bf16.mxu1 %v3045_v31 }
  0x27   :  { %2674 = vmatpush3.bf16.msra.mxu1 %v2839_v32 }
  0x28   :  { %2679 = vmatprep.subr.bf16.mxu1 %v3045_v31 }
  0x2a   :  { %2676 = vmatmul.mubr.msk.bf16.vlgmr.msra.gmra.mrb[16].mxu1 %vm219_vm0, %v3108_v6 }
  0x2b   :  { %2695 = vmatprep.mubr.msk.bf16.mxu1 %vm3046_vm1, %v3045_v31 }
  0x2c   :  { %12 = vsyncpa [#allocation3], 0  ;;  %v2842_v33 = vld [vmem:[%s3795_s3 + $0xc4] ss:$12 sps:$4 sm:$0xff]   ;;  %v2840_v34 = vld [vmem:[%s3795_s3 + $0xc0] ss:$12 sps:$4 sm:$0xff]   ;;  %v566_v58 = vlaneseq }
  0x2d   :  { %v2843_v35 = vld [vmem:[%s3795_s3 + $0xc8] ss:$12 sps:$4 sm:$0xff]   ;;  %820 = vmatprep.subr.bf16.mxu0 %v2842_v33  ;;  %v2844_v37 = vld [vmem:[%s3795_s3 + $0xd8] ss:$12 sps:$4 sm:$0xff]   ;;  %v2847_v38 = vld [vmem:[%s3795_s3 + $0xe0] ss:$12 sps:$4 sm:$0xff]  }
  0x2e   :  { %821 = vmatpush1.bf16.msra.mxu0 %v2840_v34  ;;  %2680 = vmatpush3.bf16.msra.mxu1 %v2843_v35  ;;  %v2846_v36 = vld [vmem:[%s3795_s3 + $0xdc] ss:$12 sps:$4 sm:$0xff]   ;;  %v2850_v39 = vld [vmem:[%s3795_s3 + $0xf4] ss:$12 sps:$4 sm:$0xff]   ;;  %v2851_v41 = vld [vmem:[%s3795_s3 + $0xf8] ss:$12 sps:$4 sm:$0xff]  }
  0x2f   :  { %2681 = vmatprep.subr.bf16.mxu1 %v3045_v31  ;;  %822 = vmatprep.subr.bf16.mxu0 %v2846_v36  ;;  %v2848_v40 = vld [vmem:[%s3795_s3 + $0xf0] ss:$12 sps:$4 sm:$0xff]   ;;  %v2854_v42 = vld [vmem:[%s3795_s3 + $0x10c] ss:$12 sps:$4 sm:$0xff]   ;;  %v2852_v43 = vld [vmem:[%s3795_s3 + $0x108] ss:$12 sps:$4 sm:$0xff]  }
  0x30   :  { %v2855_v44 = vld [vmem:[%s3795_s3 + $0x110] ss:$12 sps:$4 sm:$0xff]   ;;  %v2856_v46 = vld [vmem:[%s3795_s3 + $0x120] ss:$12 sps:$4 sm:$0xff]   ;;  %v2859_v47 = vld [vmem:[%s3795_s3 + $0x128] ss:$12 sps:$4 sm:$0xff]  }
  0x31   :  { %v2858_v45 = vld [vmem:[%s3795_s3 + $0x124] ss:$12 sps:$4 sm:$0xff]   ;;  %v2862_v48 = vld [vmem:[%s3795_s3 + $0x13c] ss:$12 sps:$4 sm:$0xff]   ;;  %v2863_v50 = vld [vmem:[%s3795_s3 + $0x140] ss:$12 sps:$4 sm:$0xff]  }
  0x32   :  { %823 = vmatpush1.bf16.msra.mxu0 %v2844_v37  ;;  %2682 = vmatpush3.bf16.msra.mxu1 %v2847_v38  ;;  %v2860_v49 = vld [vmem:[%s3795_s3 + $0x138] ss:$12 sps:$4 sm:$0xff]   ;;  %v2866_v51 = vld [vmem:[%s3795_s3 + $0x154] ss:$12 sps:$4 sm:$0xff]   ;;  %v2864_v52 = vld [vmem:[%s3795_s3 + $0x150] ss:$12 sps:$4 sm:$0xff]  }
  0x33   :  { %2683 = vmatprep.subr.bf16.mxu1 %v3045_v31  ;;  %824 = vmatprep.subr.bf16.mxu0 %v2850_v39  ;;  %v2867_v53 = vld [vmem:[%s3795_s3 + $0x158] ss:$12 sps:$4 sm:$0xff]   ;;  %v2868_v55 = vld [vmem:[%s3795_s3 + $0x168] ss:$12 sps:$4 sm:$0xff]   ;;  %v2871_v56 = vld [vmem:[%s3795_s3 + $0x170] ss:$12 sps:$4 sm:$0xff]  }
  0x34   :  { %v2870_v54 = vld [vmem:[%s3795_s3 + $0x16c] ss:$12 sps:$4 sm:$0xff]   ;;  %v2874_v57 = vld [vmem:[%s3795_s3 + $0x4] ss:$12 sps:$4 sm:$0xff]   ;;  %v3297_v59 = vshrl.u32 %v566_v58, 7  ;;  %vm635_vm3 = vcmask 1046528  }
  0x35   :  { %v3303_v61 = vld [vmem:[%s3794_s2] sm:$0x1f]  ;;  %vm1124_vm4 = vcmask 1045504   ;;  %vm1415_vm6 = vcmask 1044480   ;;  %vm1714_vm7 = vcmask 1043456   ;;  %vm2188_vm8 = vcmask 523264  }
  0x36   :  { %825 = vmatpush1.bf16.msra.mxu0 %v2848_v40  ;;  %2684 = vmatpush3.bf16.msra.mxu1 %v2851_v41  ;;  %v570_v60 = vsub.s32 0, %v3297_v59  ;;  %v631_v7 = vsub.s32 1, %v3297_v59  ;;  %v1120_v8 = vsub.s32 2, %v3297_v59  ;;  %vm580_vm2 = vcmp.eq.s32.totalorder %v3297_v59, 0  ;;  %s3047_s13 = smov [#allocation2]  }
  0x37   :  { %2685 = vmatprep.subr.bf16.mxu1 %v3045_v31  ;;  %826 = vmatprep.subr.bf16.mxu0 %v2854_v42  ;;  %v1411_v30 = vsub.s32 3, %v3297_v59  ;;  %v1710_v39 = vsub.s32 4, %v3297_v59  ;;  %vm590_vm5 = vcmp.eq.s32.totalorder %v3297_v59, 1  ;;  %s2279_s14 = sshll.u32 %s3047_s13, 4  ;;  %s2280_s14 = int_to_ptr.vmem [resolvable:$true] %s2279_s14 }
  0x38   :  { %v571_v62 = vrot.slane %v3303_v61, %v570_v60  ;;  %v632_v18 = vrot.slane %v3303_v61, %v631_v7  ;;  %v1121_v20 = vrot.slane %v3303_v61, %v1120_v8  ;;  %s3020_s1 = scalar_lea.vmem %s2280_s14, 32  ;;  %p3025_p1 = scmp.lt.s32.totalorder %s2280_s14, %s2280_s14 }
  0x39   :  { %p3021_p0 = scmp.ne.s32.totalorder %s2280_s14, %s3020_s1  ;;  %p3026_p2 = scmp.lt.s32.totalorder %s3020_s1, %s3020_s1 }
  0x3a   :  { %827 = vmatpush1.bf16.msra.mxu0 %v2852_v43  ;;  %2686 = vmatpush3.bf16.msra.mxu1 %v2855_v44 }
  0x3b   :  { %2687 = vmatprep.subr.bf16.mxu1 %v3045_v31  ;;  %828 = vmatprep.subr.bf16.mxu0 %v2858_v45  ;;  %p3027_p3 = por %p3026_p2, %p3025_p1 }
  0x3d   :  { %p3028_p4 = pnand %p3027_p3, %p3021_p0 }
  0x3e   :  { %829 = vmatpush1.bf16.msra.mxu0 %v2856_v46  ;;  %2688 = vmatpush3.bf16.msra.mxu1 %v2859_v47 }
  0x3f   :  { %2689 = vmatprep.subr.bf16.mxu1 %v3045_v31  ;;  %830 = vmatprep.subr.bf16.mxu0 %v2862_v48  ;;  %v3321_v48 = vrot.slane %v3303_v61, %v1411_v30 }
  0x42   :  { %831 = vmatpush1.bf16.msra.mxu0 %v2860_v49  ;;  %2690 = vmatpush3.bf16.msra.mxu1 %v2863_v50 }
  0x43   :  { %2691 = vmatprep.subr.bf16.mxu1 %v3045_v31  ;;  %832 = vmatprep.subr.bf16.mxu0 %v2866_v51 }
  0x46   :  { %833 = vmatpush1.bf16.msra.mxu0 %v2864_v52  ;;  %2692 = vmatpush3.bf16.msra.mxu1 %v2867_v53 }
  0x47   :  { %2693 = vmatprep.subr.bf16.mxu1 %v3045_v31  ;;  %834 = vmatprep.subr.bf16.mxu0 %v2870_v54 }
  0x4a   :  { %835 = vmatpush1.bf16.msra.mxu0 %v2868_v55  ;;  %2694 = vmatpush3.bf16.msra.mxu1 %v2871_v56 }
  0x4b   :  { %2699 = vmatprep.subr.bf16.mxu1 %v3045_v31  ;;  %1029 = vmatprep.subr.bf16.mxu0 %v2874_v57 }
  0xdd   :  { %v257_v63 = vpop.f32.mrb[0].mxu1 }
  0xde   :  { %v572_v0 = vadd.f32 %v571_v62, %v257_v63  ;;  %v259_v1 = vpop.f32.mrb[1].mxu1 }
  0xdf   :  { %v261_v3 = vpop.f32.mrb[2].mxu1  ;;  %v343_v11 = vpop.f32.mrb[0].mxu0 }
  0xe0   :  { %v573_v4 = vmax.f32 %v572_v0, 0.0  ;;  %v582_v5 = vadd.f32 %v571_v62, %v261_v3  ;;  %v263_v6 = vpop.f32.mrb[3].mxu1  ;;  %v1111_v12 = vrot.slane %v343_v11, 1  ;;  %v345_v13 = vpop.f32.mrb[1].mxu0  ;;  %v3324_v62 = vrot.slane %v3303_v61, %v1710_v39 }
  0xe1   :  { %v347_v16 = vpop.f32.mrb[2].mxu0  ;;  %v1115_v19 = vrot.slane %v345_v13, 2 }
  0xe2   :  { %v574_v9 = vrot.slane %v573_v4, 4  ;;  %v583_v10 = vmax.f32 %v582_v5, 0.0  ;;  %v1134_v21 = vrot.slane %v347_v16, 1  ;;  %v349_v22 = vpop.f32.mrb[3].mxu0 }
  0xe3   :  { %v1138_v29 = vrot.slane %v349_v22, 2 }
  0xe4   :  { %v575_v14 = vmax.f32 %v573_v4, %v574_v9  ;;  %v584_v15 = vrot.slane %v583_v10, 4 }
  0xe5   :  { %v300_v17 = vpop.f32.mrb[4].mxu1 }
  0xe6   :  { %v576_v23 = vrot.slane %v575_v14, 2  ;;  %v585_v24 = vmax.f32 %v583_v10, %v584_v15  ;;  %v626_v25 = vrot.slane %v300_v17, 1  ;;  %v302_v26 = vpop.f32.mrb[5].mxu1 }
  0xe7   :  { %v1113_v27 = vadd.f32 %v1111_v12, %v302_v26  ;;  %v304_v28 = vpop.f32.mrb[6].mxu1  ;;  %v429_v44 = vpop.f32.mrb[4].mxu0 }
  0xe8   :  { %v577_v32 = vmax.f32 %v575_v14, %v576_v23  ;;  %v586_v33 = vrot.slane %v585_v24, 2  ;;  %v628_v34 = vadd.f32 %v626_v25, %v259_v1  ;;  %v645_v35 = vrot.slane %v304_v28, 1  ;;  %v306_v36 = vpop.f32.mrb[7].mxu1  ;;  %v431_v47 = vpop.f32.mrb[5].mxu0 }
  0xe9   :  { %v1117_v37 = vadd.f32 %v1115_v19, %v1113_v27  ;;  %v1136_v38 = vadd.f32 %v1134_v21, %v306_v36  ;;  %v433_v53 = vpop.f32.mrb[6].mxu0  ;;  %v1402_v57 = vrot.slane %v429_v44, 2  ;;  %v1406_v15 = vrot.slane %v431_v47, 3 }
  0xea   :  { %v578_v40 = vrot.slane %v577_v32, 1  ;;  %v587_v41 = vmax.f32 %v585_v24, %v586_v33  ;;  %v633_v42 = vadd.f32 %v632_v18, %v628_v34  ;;  %v647_v43 = vadd.f32 %v645_v35, %v263_v6  ;;  %v435_v58 = vpop.f32.mrb[7].mxu0 }
  0xeb   :  { %v1122_v45 = vadd.f32 %v1121_v20, %v1117_v37  ;;  %v1140_v46 = vadd.f32 %v1138_v29, %v1136_v38  ;;  %v1429_v19 = vrot.slane %v433_v53, 2  ;;  %v1433_v27 = vrot.slane %v435_v58, 3 }
  0xec   :  { %v579_v49 = vmax.f32 %v577_v32, %v578_v40  ;;  %v588_v50 = vrot.slane %v587_v41, 1  ;;  %v634_v51 = vmax.f32 %v633_v42, 0.0  ;;  %v648_v52 = vadd.f32 %v647_v43, %v632_v18 }
  0xed   :  { %v1123_v54 = vmax.f32 %v1122_v45, 0.0  ;;  %v1141_v55 = vadd.f32 %v1140_v46, %v1121_v20  ;;  %v386_v56 = vpop.f32.mrb[8].mxu1 }
  0xee   :  { %v581_v63 = vsel %vm580_vm2, %v579_v49, 0.0  ;;  %v589_v0 = vmax.f32 %v587_v41, %v588_v50  ;;  %v636_v1 = vsel %vm635_vm3, %v634_v51, -inf  ;;  %v649_v3 = vmax.f32 %v648_v52, 0.0  ;;  %v388_v4 = vpop.f32.mrb[9].mxu1 }
  0xef   :  { %v637_v5 = vrot.slane %v636_v1, 4  ;;  %v1125_v6 = vsel %vm1124_vm4, %v1123_v54, -inf  ;;  %v1142_v9 = vmax.f32 %v1141_v55, 0.0  ;;  %v1398_v10 = vrot.slane %v388_v4, 1  ;;  %v390_v11 = vpop.f32.mrb[10].mxu1  ;;  %v515_v24 = vpop.f32.mrb[8].mxu0 }
  0xf0   :  { %v1126_v12 = vrot.slane %v1125_v6, 4  ;;  %v650_v13 = vsel %vm635_vm3, %v649_v3, -inf  ;;  %v3333_v61 = vsel %vm590_vm5, %v589_v0, %v581_v63  ;;  %v392_v14 = vpop.f32.mrb[11].mxu1  ;;  %v1697_v28 = vrot.slane %v515_v24, 2  ;;  %v517_v29 = vpop.f32.mrb[9].mxu0 }
  0xf1   :  { %v638_v16 = vmax.f32 %v636_v1, %v637_v5  ;;  %v651_v17 = vrot.slane %v650_v13, 4  ;;  %v1143_v18 = vsel %vm1124_vm4, %v1142_v9, -inf  ;;  %v1400_v22 = vadd.f32 %v1398_v10, %v386_v56  ;;  %v519_v35 = vpop.f32.mrb[10].mxu0  ;;  %v2878_v24 = vld [vmem:[%s3795_s3 + $0x1c] ss:$12 sps:$4 sm:$0xff]  }
  0xf2   :  { %v1127_v20 = vmax.f32 %v1125_v6, %v1126_v12  ;;  %v1144_v21 = vrot.slane %v1143_v18, 4  ;;  %v1425_v23 = vrot.slane %v392_v14, 1  ;;  %v1701_v39 = vrot.slane %v517_v29, 3  ;;  %v521_v41 = vpop.f32.mrb[11].mxu0 }
  0xf3   :  { %v639_v25 = vrot.slane %v638_v16, 2  ;;  %v652_v26 = vmax.f32 %v650_v13, %v651_v17  ;;  %v1404_v34 = vadd.f32 %v1402_v57, %v1400_v22  ;;  %v1728_v40 = vrot.slane %v519_v35, 2  ;;  %v2872_v17 = vld [vmem:[%s3795_s3] ss:$12 sps:$4 sm:$0xff]  }
  0xf4   :  { %v1128_v30 = vrot.slane %v1127_v20, 2  ;;  %v1145_v32 = vmax.f32 %v1143_v18, %v1144_v21  ;;  %v1427_v33 = vadd.f32 %v1425_v23, %v390_v11  ;;  %v1732_v52 = vrot.slane %v521_v41, 3  ;;  %v2875_v18 = vld [vmem:[%s3795_s3 + $0x8] ss:$12 sps:$4 sm:$0xff]  }
  0xf5   :  { %v640_v36 = vmax.f32 %v638_v16, %v639_v25  ;;  %v653_v37 = vrot.slane %v652_v26, 2  ;;  %v472_v38 = vpop.f32.mrb[12].mxu1  ;;  %v1408_v44 = vadd.f32 %v1406_v15, %v1404_v34  ;;  %v2882_v41 = vld [vmem:[%s3795_s3 + $0x34] ss:$12 sps:$4 sm:$0xff]  }
  0xf6   :  { %v1129_v42 = vmax.f32 %v1127_v20, %v1128_v30  ;;  %v1146_v43 = vrot.slane %v1145_v32, 2  ;;  %v1431_v45 = vadd.f32 %v1429_v19, %v1427_v33  ;;  %v474_v46 = vpop.f32.mrb[13].mxu1 }
  0xf7   :  { %v641_v47 = vrot.slane %v640_v36, 1  ;;  %v654_v49 = vmax.f32 %v652_v26, %v653_v37  ;;  %v1693_v50 = vrot.slane %v474_v46, 1  ;;  %v476_v51 = vpop.f32.mrb[14].mxu1  ;;  %v1413_v55 = vadd.f32 %v3321_v48, %v1408_v44  ;;  %v2876_v37 = vld [vmem:[%s3795_s3 + $0x18] ss:$12 sps:$4 sm:$0xff]  }
  0xf8   :  { %v1130_v53 = vrot.slane %v1129_v42, 1  ;;  %v1147_v54 = vmax.f32 %v1145_v32, %v1146_v43  ;;  %v1435_v56 = vadd.f32 %v1433_v27, %v1431_v45  ;;  %v478_v57 = vpop.f32.mrb[15].mxu1 }
  0xf9   :  { %v655_v58 = vrot.slane %v654_v49, 1  ;;  %v642_v63 = vmax.f32 %v640_v36, %v641_v47  ;;  %v1695_v0 = vadd.f32 %v1693_v50, %v472_v38  ;;  %v1724_v1 = vrot.slane %v478_v57, 1  ;;  %v2879_v38 = vld [vmem:[%s3795_s3 + $0x20] ss:$12 sps:$4 sm:$0xff]   ;;  %v2883_v50 = vld [vmem:[%s3795_s3 + $0x38] ss:$12 sps:$4 sm:$0xff]  }
  0xfa   :  { %v1148_v3 = vrot.slane %v1147_v54, 1  ;;  %v1414_v4 = vmax.f32 %v1413_v55, 0.0  ;;  %v1436_v5 = vadd.f32 %v1435_v56, %v3321_v48  ;;  %v1131_v6 = vmax.f32 %v1129_v42, %v1130_v53  ;;  %v2886_v53 = vld [vmem:[%s3795_s3 + $0x4c] ss:$12 sps:$4 sm:$0xff]  }
  0xfb   :  { %v656_v9 = vmax.f32 %v654_v49, %v655_v58  ;;  %v643_v10 = vsel %vm580_vm2, %v642_v63, 0.0  ;;  %v1726_v11 = vadd.f32 %v1724_v1, %v476_v51  ;;  %v1699_v12 = vadd.f32 %v1697_v28, %v1695_v0  ;;  %v2880_v49 = vld [vmem:[%s3795_s3 + $0x30] ss:$12 sps:$4 sm:$0xff]   ;;  %v2884_v63 = vld [vmem:[%s3795_s3 + $0x48] ss:$12 sps:$4 sm:$0xff]  }
  0xfc   :  { %v1149_v13 = vmax.f32 %v1147_v54, %v1148_v3  ;;  %v1416_v14 = vsel %vm1415_vm6, %v1414_v4, -inf  ;;  %v1437_v15 = vmax.f32 %v1436_v5, 0.0  ;;  %v1132_v16 = vsel %vm580_vm2, %v1131_v6, 0.0  ;;  %v2887_v0 = vld [vmem:[%s3795_s3 + $0x50] ss:$12 sps:$4 sm:$0xff]  }
  0xfd   :  { %v657_v48 = vsel %vm590_vm5, %v656_v9, %v643_v10  ;;  %v1417_v19 = vrot.slane %v1416_v14, 4  ;;  %v1703_v20 = vadd.f32 %v1701_v39, %v1699_v12  ;;  %v1730_v21 = vadd.f32 %v1728_v40, %v1726_v11  ;;  %v558_v22 = vpop.f32.mrb[16].mxu1  ;;  %v2890_v6 = vld [vmem:[%s3795_s3 + $0x64] ss:$12 sps:$4 sm:$0xff]   ;;  %v2888_v12 = vld [vmem:[%s3795_s3 + $0x60] ss:$12 sps:$4 sm:$0xff]  }
  0xfe   :  { %v658_v23 = vpack.c.bf16 %v657_v48, %v657_v48  ;;  %v1438_v25 = vsel %vm1415_vm6, %v1437_v15, -inf  ;;  %v3357_v26 = vsel %vm590_vm5, %v1149_v13, %v1132_v16  ;;  %v1705_v27 = vrot.slane %v558_v22, 4  ;;  %v2677_v28 = vpop.f32.mrb[17].mxu1  ;;  %v2891_v13 = vld [vmem:[%s3795_s3 + $0x68] ss:$12 sps:$4 sm:$0xff]  }
  0xff   :  { %v1418_v29 = vmax.f32 %v1416_v14, %v1417_v19  ;;  %v1439_v30 = vrot.slane %v1438_v25, 4  ;;  %v1734_v32 = vadd.f32 %v1732_v52, %v1730_v21  ;;  %v561_v33 = vpop.f32.mrb[18].mxu1  ;;  %v2894_v16 = vld [vmem:[%s3795_s3 + $0x7c] ss:$12 sps:$4 sm:$0xff]   ;;  %v2895_v19 = vld [vmem:[%s3795_s3 + $0x80] ss:$12 sps:$4 sm:$0xff]  }
 0x100   :  { %853 = vmatmul.mubr.bf16.vlgmr.msra.gmra.mrb[12].mxu0 %v658_v23  ;;  %2696 = vmatmul.mubr.bf16.vlgmr.msra.gmra.mrb[20].mxu1 %v658_v23  ;;  %v1707_v34 = vadd.f32 %v1705_v27, %v1703_v20  ;;  %v1736_v35 = vrot.slane %v561_v33, 4  ;;  %v2678_v36 = vpop.f32.mrb[19].mxu1  ;;  %v2898_v22 = vld [vmem:[%s3795_s3 + $0x94] ss:$12 sps:$4 sm:$0xff]   ;;  %v2899_v27 = vld [vmem:[%s3795_s3 + $0x98] ss:$12 sps:$4 sm:$0xff]  }
 0x101   :  { %1030 = vmatpush1.bf16.msra.mxu0 %v2872_v17  ;;  %2700 = vmatpush3.bf16.msra.mxu1 %v2875_v18  ;;  %v1419_v39 = vrot.slane %v1418_v29, 2  ;;  %v1440_v40 = vmax.f32 %v1438_v25, %v1439_v30  ;;  %v2892_v18 = vld [vmem:[%s3795_s3 + $0x78] ss:$12 sps:$4 sm:$0xff]   ;;  %v2896_v25 = vld [vmem:[%s3795_s3 + $0x90] ss:$12 sps:$4 sm:$0xff]   ;;  %v592_v36 = vpack.c.bf16 %v3333_v61, %v3333_v61 }
 0x102   :  { %1031 = vmatprep.subr.bf16.mxu0 %v2878_v24  ;;  %2701 = vmatprep.subr.bf16.mxu1 %v3045_v31  ;;  %v1712_v42 = vadd.f32 %v3324_v62, %v1707_v34  ;;  %v1738_v43 = vadd.f32 %v1736_v35, %v1734_v32  ;;  %v2900_v30 = vld [vmem:[%s3795_s3 + $0xa8] ss:$12 sps:$4 sm:$0xff]   ;;  %v2903_v32 = vld [vmem:[%s3795_s3 + $0xb0] ss:$12 sps:$4 sm:$0xff]   ;;  %v2904_v34 = vld [vmem:[%s3795_s3 + $0x180] ss:$12 sps:$4 sm:$0xff]  }
 0x103   :  { %1061 = vmatprep.mubr.bf16.mxu0 %v3044_v2  ;;  %2715 = vmatprep.mubr.msk.bf16.mxu1 %vm3046_vm1, %v3045_v31  ;;  %v1420_v44 = vmax.f32 %v1418_v29, %v1419_v39  ;;  %v1441_v45 = vrot.slane %v1440_v40, 2  ;;  %v2902_v29 = vld [vmem:[%s3795_s3 + $0xac] ss:$12 sps:$4 sm:$0xff]   ;;  %v2906_v33 = vld [vmem:[%s3795_s3 + $0x184] ss:$12 sps:$4 sm:$0xff]  }
 0x104   :  { %v1713_v46 = vmax.f32 %v1712_v42, 0.0  ;;  %v1739_v47 = vadd.f32 %v1738_v43, %v3324_v62  ;;  %v2907_v35 = vld [vmem:[%s3795_s3 + $0x188] ss:$12 sps:$4 sm:$0xff]   ;;  %v2911_v39 = vld [vmem:[%s3795_s3 + $0x1a0] ss:$12 sps:$4 sm:$0xff]  }
 0x105   :  { %1032 = vmatpush1.bf16.msra.mxu0 %v2876_v37  ;;  %2702 = vmatpush3.bf16.msra.mxu1 %v2879_v38  ;;  %v1421_v51 = vrot.slane %v1420_v44, 1  ;;  %v1442_v52 = vmax.f32 %v1440_v40, %v1441_v45  ;;  %v2910_v37 = vld [vmem:[%s3795_s3 + $0x19c] ss:$12 sps:$4 sm:$0xff]   ;;  %v2908_v38 = vld [vmem:[%s3795_s3 + $0x198] ss:$12 sps:$4 sm:$0xff]  }
 0x106   :  { %1033 = vmatprep.subr.bf16.mxu0 %v2882_v41  ;;  %2703 = vmatprep.subr.bf16.mxu1 %v3045_v31  ;;  %v1715_v62 = vsel %vm1714_vm7, %v1713_v46, -inf  ;;  %v1740_v54 = vmax.f32 %v1739_v47, 0.0  ;;  %v2914_v61 = vld [vmem:[%s3795_s3 + $0x1b4] ss:$12 sps:$4 sm:$0xff]   ;;  %v2912_v40 = vld [vmem:[%s3795_s3 + $0x1b0] ss:$12 sps:$4 sm:$0xff]  }
 0x107   :  { %v1443_v55 = vrot.slane %v1442_v52, 1  ;;  %v1716_v56 = vrot.slane %v1715_v62, 4  ;;  %v1422_v57 = vmax.f32 %v1420_v44, %v1421_v51  ;;  %v2915_v41 = vld [vmem:[%s3795_s3 + $0x1b8] ss:$12 sps:$4 sm:$0xff]   ;;  %v2916_v43 = vld [vmem:[%s3795_s3 + $0x1c8] ss:$12 sps:$4 sm:$0xff]  }
 0x108   :  { %v1741_v58 = vsel %vm1714_vm7, %v1740_v54, -inf  ;;  %v2918_v42 = vld [vmem:[%s3795_s3 + $0x1cc] ss:$12 sps:$4 sm:$0xff]   ;;  %v2919_v44 = vld [vmem:[%s3795_s3 + $0x1d0] ss:$12 sps:$4 sm:$0xff]  }
 0x109   :  { %1034 = vmatpush1.bf16.msra.mxu0 %v2880_v49  ;;  %2704 = vmatpush3.bf16.msra.mxu1 %v2883_v50  ;;  %v1444_v1 = vmax.f32 %v1442_v52, %v1443_v55  ;;  %v1717_v3 = vmax.f32 %v1715_v62, %v1716_v56  ;;  %v1742_v4 = vrot.slane %v1741_v58, 4  ;;  %v1423_v5 = vsel %vm580_vm2, %v1422_v57, 0.0  ;;  %v2922_v45 = vld [vmem:[%s3795_s3 + $0x1e4] ss:$12 sps:$4 sm:$0xff]   ;;  %v2920_v46 = vld [vmem:[%s3795_s3 + $0x1e0] ss:$12 sps:$4 sm:$0xff]  }
 0x10a   :  { %1035 = vmatprep.subr.bf16.mxu0 %v2886_v53  ;;  %2705 = vmatprep.subr.bf16.mxu1 %v3045_v31  ;;  %v2923_v47 = vld [vmem:[%s3795_s3 + $0x1e8] ss:$12 sps:$4 sm:$0xff]   ;;  %v2924_v50 = vld [vmem:[%s3795_s3 + $0x1f8] ss:$12 sps:$4 sm:$0xff]   ;;  %v2927_v51 = vld [vmem:[%s3795_s3 + $0x200] ss:$12 sps:$4 sm:$0xff]  }
 0x10b   :  { %v1718_v9 = vrot.slane %v1717_v3, 2  ;;  %v1743_v10 = vmax.f32 %v1741_v58, %v1742_v4  ;;  %v3400_v11 = vsel %vm590_vm5, %v1444_v1, %v1423_v5  ;;  %v2926_v49 = vld [vmem:[%s3795_s3 + $0x1fc] ss:$12 sps:$4 sm:$0xff]   ;;  %v2930_v52 = vld [vmem:[%s3795_s3 + $0x214] ss:$12 sps:$4 sm:$0xff]  }
 0x10c   :  { %v2928_v53 = vld [vmem:[%s3795_s3 + $0x210] ss:$12 sps:$4 sm:$0xff]   ;;  %v2931_v62 = vld [vmem:[%s3795_s3 + $0x218] ss:$12 sps:$4 sm:$0xff]   ;;  %v2932_v55 = vld [vmem:[%s3795_s3 + $0x228] ss:$12 sps:$4 sm:$0xff]  }
 0x10d   :  { %1036 = vmatpush1.bf16.msra.mxu0 %v2884_v63  ;;  %2706 = vmatpush3.bf16.msra.mxu1 %v2887_v0  ;;  %v1719_v14 = vmax.f32 %v1717_v3, %v1718_v9  ;;  %v1744_v15 = vrot.slane %v1743_v10, 2  ;;  %v2934_v54 = vld [vmem:[%s3795_s3 + $0x22c] ss:$12 sps:$4 sm:$0xff]   ;;  %v2935_v56 = vld [vmem:[%s3795_s3 + $0x230] ss:$12 sps:$4 sm:$0xff]   ;;  %v1151_v0 = vpack.c.bf16 %v3357_v26, %v3357_v26 }
 0x10e   :  { %1037 = vmatprep.subr.bf16.mxu0 %v2890_v6  ;;  %2707 = vmatprep.subr.bf16.mxu1 %v3045_v31  ;;  %v2938_v57 = vld [vmem:[%s3795_s3 + $0x244] ss:$12 sps:$4 sm:$0xff]   ;;  %v2936_v58 = vld [vmem:[%s3795_s3 + $0x240] ss:$12 sps:$4 sm:$0xff]   ;;  %v2939_v63 = vld [vmem:[%s3795_s3 + $0x248] ss:$12 sps:$4 sm:$0xff]  }
 0x10f   :  { %v1720_v17 = vrot.slane %v1719_v14, 1  ;;  %v1745_v48 = vmax.f32 %v1743_v10, %v1744_v15  ;;  %v2942_v1 = vld [vmem:[%s3795_s3 + $0x25c] ss:$12 sps:$4 sm:$0xff]   ;;  %v2940_v3 = vld [vmem:[%s3795_s3 + $0x258] ss:$12 sps:$4 sm:$0xff]  }
 0x110   :  { %v2943_v4 = vld [vmem:[%s3795_s3 + $0x260] ss:$12 sps:$4 sm:$0xff]   ;;  %v2944_v5 = vld [vmem:[%s3795_s3 + $0x270] ss:$12 sps:$4 sm:$0xff]   ;;  %v2947_v6 = vld [vmem:[%s3795_s3 + $0x278] ss:$12 sps:$4 sm:$0xff]  }
 0x111   :  { %1038 = vmatpush1.bf16.msra.mxu0 %v2888_v12  ;;  %2708 = vmatpush3.bf16.msra.mxu1 %v2891_v13  ;;  %v1746_v20 = vrot.slane %v1745_v48, 1  ;;  %v1721_v21 = vmax.f32 %v1719_v14, %v1720_v17  ;;  %v2946_v26 = vld [vmem:[%s3795_s3 + $0x274] ss:$12 sps:$4 sm:$0xff]   ;;  %v2950_v9 = vld [vmem:[%s3795_s3 + $0x28c] ss:$12 sps:$4 sm:$0xff]  }
 0x112   :  { %1039 = vmatprep.subr.bf16.mxu0 %v2894_v16  ;;  %2709 = vmatprep.subr.bf16.mxu1 %v3045_v31  ;;  %v2948_v10 = vld [vmem:[%s3795_s3 + $0x288] ss:$12 sps:$4 sm:$0xff]   ;;  %v2951_v12 = vld [vmem:[%s3795_s3 + $0x290] ss:$12 sps:$4 sm:$0xff]   ;;  %v2952_v14 = vld [vmem:[%s3795_s3 + $0x2a0] ss:$12 sps:$4 sm:$0xff]  }
 0x113   :  { %v1747_v23 = vmax.f32 %v1745_v48, %v1746_v20  ;;  %v1722_v24 = vsel %vm580_vm2, %v1721_v21, 0.0  ;;  %v2954_v13 = vld [vmem:[%s3795_s3 + $0x2a4] ss:$12 sps:$4 sm:$0xff]   ;;  %v2955_v15 = vld [vmem:[%s3795_s3 + $0x2a8] ss:$12 sps:$4 sm:$0xff]  }
 0x114   :  { %v2958_v16 = vld [vmem:[%s3795_s3 + $0x2bc] ss:$12 sps:$4 sm:$0xff]   ;;  %v2956_v17 = vld [vmem:[%s3795_s3 + $0x2b8] ss:$12 sps:$4 sm:$0xff]   ;;  %v2959_v48 = vld [vmem:[%s3795_s3 + $0x2c0] ss:$12 sps:$4 sm:$0xff]  }
 0x115   :  { %1040 = vmatpush1.bf16.msra.mxu0 %v2892_v18  ;;  %2710 = vmatpush3.bf16.msra.mxu1 %v2895_v19  ;;  %v3432_v28 = vsel %vm590_vm5, %v1747_v23, %v1722_v24  ;;  %v2962_v18 = vld [vmem:[%s3795_s3 + $0x2d4] ss:$12 sps:$4 sm:$0xff]   ;;  %v2960_v19 = vld [vmem:[%s3795_s3 + $0x2d0] ss:$12 sps:$4 sm:$0xff]   ;;  %v2963_v20 = vld [vmem:[%s3795_s3 + $0x2d8] ss:$12 sps:$4 sm:$0xff]  }
 0x116   :  { %1041 = vmatprep.subr.bf16.mxu0 %v2898_v22  ;;  %2711 = vmatprep.subr.bf16.mxu1 %v3045_v31  ;;  %v2966_v21 = vld [vmem:[%s3795_s3 + $0x2ec] ss:$12 sps:$4 sm:$0xff]   ;;  %v2964_v22 = vld [vmem:[%s3795_s3 + $0x2e8] ss:$12 sps:$4 sm:$0xff]   ;;  %v2967_v23 = vld [vmem:[%s3795_s3 + $0x2f0] ss:$12 sps:$4 sm:$0xff]  }
 0x117   :  { %v2970_v24 = vld [vmem:[%s3795_s3 + $0x304] ss:$12 sps:$4 sm:$0xff]  }
 0x119   :  { %1042 = vmatpush1.bf16.msra.mxu0 %v2896_v25  ;;  %2712 = vmatpush3.bf16.msra.mxu1 %v2899_v27  ;;  %v2968_v25 = vld [vmem:[%s3795_s3 + $0x300] ss:$12 sps:$4 sm:$0xff]   ;;  %v2971_v27 = vld [vmem:[%s3795_s3 + $0x308] ss:$12 sps:$4 sm:$0xff]  }
 0x11a   :  { %1043 = vmatprep.subr.bf16.mxu0 %v2902_v29  ;;  %2713 = vmatprep.subr.bf16.mxu1 %v3045_v31  ;;  %v1446_v29 = vpack.c.bf16 %v3400_v11, %v3400_v11  ;;  %v2978_v11 = vld [vmem:[%s3795_s3 + $0x334] ss:$12 sps:$4 sm:$0xff]  }
 0x11d   :  { %1044 = vmatpush1.bf16.msra.mxu0 %v2900_v30  ;;  %2714 = vmatpush3.bf16.msra.mxu1 %v2903_v32  ;;  %v2974_v30 = vld [vmem:[%s3795_s3 + $0x31c] ss:$12 sps:$4 sm:$0xff]   ;;  %v2972_v32 = vld [vmem:[%s3795_s3 + $0x318] ss:$12 sps:$4 sm:$0xff]  }
 0x11e   :  { %1313 = vmatprep.subr.bf16.mxu0 %v2906_v33  ;;  %2719 = vmatprep.subr.bf16.mxu1 %v3045_v31  ;;  %v2975_v33 = vld [vmem:[%s3795_s3 + $0x320] ss:$12 sps:$4 sm:$0xff]  }
 0x120   :  { %1062 = vmatmul.mubr.bf16.vlgmr.msra.gmra.mrb[16].mxu0 %v592_v36  ;;  %2716 = vmatmul.mubr.bf16.vlgmr.msra.gmra.mrb[24].mxu1 %v592_v36  ;;  %v2980_v36 = vld [vmem:[%s3795_s3 + $0x348] ss:$12 sps:$4 sm:$0xff]  }
 0x121   :  { %1314 = vmatpush1.bf16.msra.mxu0 %v2904_v34  ;;  %2720 = vmatpush3.bf16.msra.mxu1 %v2907_v35  ;;  %v2976_v34 = vld [vmem:[%s3795_s3 + $0x330] ss:$12 sps:$4 sm:$0xff]   ;;  %v2979_v35 = vld [vmem:[%s3795_s3 + $0x338] ss:$12 sps:$4 sm:$0xff]  }
 0x122   :  { %1315 = vmatprep.subr.bf16.mxu0 %v2910_v37  ;;  %2721 = vmatprep.subr.bf16.mxu1 %v3045_v31  ;;  %v2983_v37 = vld [vmem:[%s3795_s3 + $0x350] ss:$12 sps:$4 sm:$0xff]  }
 0x123   :  { %1345 = vmatprep.mubr.bf16.mxu0 %v3044_v2  ;;  %2735 = vmatprep.mubr.msk.bf16.mxu1 %vm3046_vm1, %v3045_v31 }
 0x125   :  { %1316 = vmatpush1.bf16.msra.mxu0 %v2908_v38  ;;  %2722 = vmatpush3.bf16.msra.mxu1 %v2911_v39  ;;  %v2986_v38 = vld [vmem:[%s3795_s3 + $0x364] ss:$12 sps:$4 sm:$0xff]   ;;  %v2984_v39 = vld [vmem:[%s3795_s3 + $0x360] ss:$12 sps:$4 sm:$0xff]  }
 0x126   :  { %1317 = vmatprep.subr.bf16.mxu0 %v2914_v61  ;;  %2723 = vmatprep.subr.bf16.mxu1 %v3045_v31  ;;  %v2987_v61 = vld [vmem:[%s3795_s3 + $0x368] ss:$12 sps:$4 sm:$0xff]  }
 0x129   :  { %1318 = vmatpush1.bf16.msra.mxu0 %v2912_v40  ;;  %2724 = vmatpush3.bf16.msra.mxu1 %v2915_v41  ;;  %v2990_v40 = vld [vmem:[%s3795_s3 + $0x37c] ss:$12 sps:$4 sm:$0xff]   ;;  %v2988_v41 = vld [vmem:[%s3795_s3 + $0x378] ss:$12 sps:$4 sm:$0xff]  }
 0x12a   :  { %1319 = vmatprep.subr.bf16.mxu0 %v2918_v42  ;;  %2725 = vmatprep.subr.bf16.mxu1 %v3045_v31  ;;  %v2991_v42 = vld [vmem:[%s3795_s3 + $0x380] ss:$12 sps:$4 sm:$0xff]  }
 0x12d   :  { %1320 = vmatpush1.bf16.msra.mxu0 %v2916_v43  ;;  %2726 = vmatpush3.bf16.msra.mxu1 %v2919_v44  ;;  %v2994_v43 = vld [vmem:[%s3795_s3 + $0x394] ss:$12 sps:$4 sm:$0xff]   ;;  %v2992_v44 = vld [vmem:[%s3795_s3 + $0x390] ss:$12 sps:$4 sm:$0xff]  }
 0x12e   :  { %1321 = vmatprep.subr.bf16.mxu0 %v2922_v45  ;;  %2727 = vmatprep.subr.bf16.mxu1 %v3045_v31  ;;  %v2995_v45 = vld [vmem:[%s3795_s3 + $0x398] ss:$12 sps:$4 sm:$0xff]  }
 0x131   :  { %1322 = vmatpush1.bf16.msra.mxu0 %v2920_v46  ;;  %2728 = vmatpush3.bf16.msra.mxu1 %v2923_v47  ;;  %v2998_v46 = vld [vmem:[%s3795_s3 + $0x3ac] ss:$12 sps:$4 sm:$0xff]   ;;  %v2996_v47 = vld [vmem:[%s3795_s3 + $0x3a8] ss:$12 sps:$4 sm:$0xff]  }
 0x132   :  { %1323 = vmatprep.subr.bf16.mxu0 %v2926_v49  ;;  %2729 = vmatprep.subr.bf16.mxu1 %v3045_v31  ;;  %v2999_v49 = vld [vmem:[%s3795_s3 + $0x3b0] ss:$12 sps:$4 sm:$0xff]  }
 0x135   :  { %1324 = vmatpush1.bf16.msra.mxu0 %v2924_v50  ;;  %2730 = vmatpush3.bf16.msra.mxu1 %v2927_v51  ;;  %v1749_v50 = vpack.c.bf16 %v3432_v28, %v3432_v28  ;;  %v3000_v51 = vld [vmem:[%s3797_s5 + $0x40] sm:$0xff]  }
 0x136   :  { %1325 = vmatprep.subr.bf16.mxu0 %v2930_v52  ;;  %2731 = vmatprep.subr.bf16.mxu1 %v3045_v31  ;;  %v3001_v52 = vld [vmem:[%s3797_s5] sm:$0xff]  }
 0x137   :  { %v3008_v28 = vld [vmem:[%s3797_s5 + $0x80] sm:$0xff]  }
 0x139   :  { %1326 = vmatpush1.bf16.msra.mxu0 %v2928_v53  ;;  %2732 = vmatpush3.bf16.msra.mxu1 %v2931_v62  ;;  %v3002_v53 = vld [vmem:[%s3797_s5 + $0x48] sm:$0xff]  }
 0x13a   :  { %1327 = vmatprep.subr.bf16.mxu0 %v2934_v54  ;;  %2733 = vmatprep.subr.bf16.mxu1 %v3045_v31  ;;  %v3003_v62 = vld [vmem:[%s3797_s5 + $0x8] sm:$0xff]   ;;  %v3004_v54 = vld [vmem:[%s3797_s5 + $0x50] sm:$0xff]  }
 0x13d   :  { %1328 = vmatpush1.bf16.msra.mxu0 %v2932_v55  ;;  %2734 = vmatpush3.bf16.msra.mxu1 %v2935_v56  ;;  %v3011_v55 = vld [vmem:[%s3797_s5 + $0x88] sm:$0xff]   ;;  %v3005_v56 = vld [vmem:[%s3797_s5 + $0x10] sm:$0xff]  }
 0x13e   :  { %1608 = vmatprep.subr.bf16.mxu0 %v2938_v57  ;;  %2739 = vmatprep.subr.bf16.mxu1 %v3045_v31  ;;  %v3006_v57 = vld [vmem:[%s3797_s5 + $0x58] sm:$0xff]  }
 0x140   :  { %1346 = vmatmul.mubr.bf16.vlgmr.msra.gmra.mrb[20].mxu0 %v1151_v0  ;;  %2736 = vmatmul.mubr.bf16.vlgmr.msra.gmra.mrb[28].mxu1 %v1151_v0  ;;  %v3010_v0 = vld [vmem:[%s3797_s5 + $0x20] sm:$0xff]  }
 0x141   :  { %1609 = vmatpush1.bf16.msra.mxu0 %v2936_v58  ;;  %2740 = vmatpush3.bf16.msra.mxu1 %v2939_v63  ;;  %v3007_v58 = vld [vmem:[%s3797_s5 + $0x18] sm:$0xff]   ;;  %v3009_v63 = vld [vmem:[%s3797_s5 + $0x60] sm:$0xff]  }
 0x142   :  { %1610 = vmatprep.subr.bf16.mxu0 %v2942_v1  ;;  %2741 = vmatprep.subr.bf16.mxu1 %v3045_v31  ;;  %v3012_v1 = vld [vmem:[%s3797_s5 + $0x68] sm:$0xff]  }
 0x143   :  { %1640 = vmatprep.mubr.bf16.mxu0 %v3044_v2  ;;  %2755 = vmatprep.mubr.msk.bf16.mxu1 %vm3046_vm1, %v3045_v31 }
 0x145   :  { %1611 = vmatpush1.bf16.msra.mxu0 %v2940_v3  ;;  %2742 = vmatpush3.bf16.msra.mxu1 %v2943_v4  ;;  %v3013_v3 = vld [vmem:[%s3797_s5 + $0x28] sm:$0xff]  }
 0x146   :  { %1612 = vmatprep.subr.bf16.mxu0 %v2946_v26  ;;  %2743 = vmatprep.subr.bf16.mxu1 %v3045_v31 }
 0x149   :  { %1613 = vmatpush1.bf16.msra.mxu0 %v2944_v5  ;;  %2744 = vmatpush3.bf16.msra.mxu1 %v2947_v6  ;;  %v3014_v5 = vld [vmem:[%s3797_s5 + $0x90] sm:$0xff]  }
 0x14a   :  { %1614 = vmatprep.subr.bf16.mxu0 %v2950_v9  ;;  %2745 = vmatprep.subr.bf16.mxu1 %v3045_v31 }
 0x14d   :  { %1615 = vmatpush1.bf16.msra.mxu0 %v2948_v10  ;;  %2746 = vmatpush3.bf16.msra.mxu1 %v2951_v12  ;;  %v3015_v10 = vld [vmem:[%s3797_s5 + $0x70] sm:$0xff]  }
 0x14e   :  { %1616 = vmatprep.subr.bf16.mxu0 %v2954_v13  ;;  %2747 = vmatprep.subr.bf16.mxu1 %v3045_v31 }
 0x151   :  { %1617 = vmatpush1.bf16.msra.mxu0 %v2952_v14  ;;  %2748 = vmatpush3.bf16.msra.mxu1 %v2955_v15  ;;  %v3016_v14 = vld [vmem:[%s3797_s5 + $0x30] sm:$0xff]  }
 0x152   :  { %1618 = vmatprep.subr.bf16.mxu0 %v2958_v16  ;;  %2749 = vmatprep.subr.bf16.mxu1 %v3045_v31 }
 0x155   :  { %1619 = vmatpush1.bf16.msra.mxu0 %v2956_v17  ;;  %2750 = vmatpush3.bf16.msra.mxu1 %v2959_v48  ;;  %v3017_v17 = vld [vmem:[%s3797_s5 + $0x98] sm:$0xff]  }
 0x156   :  { %1620 = vmatprep.subr.bf16.mxu0 %v2962_v18  ;;  %2751 = vmatprep.subr.bf16.mxu1 %v3045_v31  ;;  %v3018_v48 = vld [vmem:[%s3797_s5 + $0x78] sm:$0xff]  }
 0x157   :  { %v3019_v18 = vld [vmem:[%s3797_s5 + $0x38] sm:$0xff]  }
 0x159   :  { %1621 = vmatpush1.bf16.msra.mxu0 %v2960_v19  ;;  %2752 = vmatpush3.bf16.msra.mxu1 %v2963_v20 }
 0x15a   :  { %1622 = vmatprep.subr.bf16.mxu0 %v2966_v21  ;;  %2753 = vmatprep.subr.bf16.mxu1 %v3045_v31 }
 0x15d   :  { %1623 = vmatpush1.bf16.msra.mxu0 %v2964_v22  ;;  %2754 = vmatpush3.bf16.msra.mxu1 %v2967_v23 }
 0x15e   :  { %1911 = vmatprep.subr.bf16.mxu0 %v2970_v24  ;;  %2759 = vmatprep.subr.bf16.mxu1 %v3045_v31 }
 0x160   :  { %1641 = vmatmul.mubr.bf16.vlgmr.msra.gmra.mrb[24].mxu0 %v1446_v29  ;;  %2756 = vmatmul.mubr.bf16.vlgmr.msra.gmra.mrb[32].mxu1 %v1446_v29 }
 0x161   :  { %1912 = vmatpush1.bf16.msra.mxu0 %v2968_v25  ;;  %2760 = vmatpush3.bf16.msra.mxu1 %v2971_v27 }
 0x162   :  { %1913 = vmatprep.subr.bf16.mxu0 %v2974_v30  ;;  %2761 = vmatprep.subr.bf16.mxu1 %v3045_v31 }
 0x163   :  { %1943 = vmatprep.mubr.bf16.mxu0 %v3044_v2  ;;  %2775 = vmatprep.mubr.msk.bf16.mxu1 %vm3046_vm1, %v3045_v31  ;;  %v2982_v2 = vld [vmem:[%s3795_s3 + $0x34c] ss:$12 sps:$4 sm:$0xff]  }
 0x165   :  { %1914 = vmatpush1.bf16.msra.mxu0 %v2972_v32  ;;  %2762 = vmatpush3.bf16.msra.mxu1 %v2975_v33 }
 0x166   :  { %1915 = vmatprep.subr.bf16.mxu0 %v2978_v11  ;;  %2763 = vmatprep.subr.bf16.mxu1 %v3045_v31 }
 0x169   :  { %1916 = vmatpush1.bf16.msra.mxu0 %v2976_v34  ;;  %2764 = vmatpush3.bf16.msra.mxu1 %v2979_v35 }
 0x16a   :  { %1917 = vmatprep.subr.bf16.mxu0 %v2982_v2  ;;  %2765 = vmatprep.subr.bf16.mxu1 %v3045_v31 }
 0x16d   :  { %1918 = vmatpush1.bf16.msra.mxu0 %v2980_v36  ;;  %2766 = vmatpush3.bf16.msra.mxu1 %v2983_v37 }
 0x16e   :  { %1919 = vmatprep.subr.bf16.mxu0 %v2986_v38  ;;  %2767 = vmatprep.subr.bf16.mxu1 %v3045_v31 }
 0x171   :  { %1920 = vmatpush1.bf16.msra.mxu0 %v2984_v39  ;;  %2768 = vmatpush3.bf16.msra.mxu1 %v2987_v61 }
 0x172   :  { %1921 = vmatprep.subr.bf16.mxu0 %v2990_v40  ;;  %2769 = vmatprep.subr.bf16.mxu1 %v3045_v31 }
 0x175   :  { %1922 = vmatpush1.bf16.msra.mxu0 %v2988_v41  ;;  %2770 = vmatpush3.bf16.msra.mxu1 %v2991_v42 }
 0x176   :  { %1923 = vmatprep.subr.bf16.mxu0 %v2994_v43  ;;  %2771 = vmatprep.subr.bf16.mxu1 %v3045_v31 }
 0x179   :  { %1924 = vmatpush1.bf16.msra.mxu0 %v2992_v44  ;;  %2772 = vmatpush3.bf16.msra.mxu1 %v2995_v45 }
 0x17a   :  { %1925 = vmatprep.subr.bf16.mxu0 %v2998_v46  ;;  %2773 = vmatprep.subr.bf16.mxu1 %v3045_v31 }
 0x17d   :  { %1926 = vmatpush1.bf16.msra.mxu0 %v2996_v47  ;;  %2774 = vmatpush3.bf16.msra.mxu1 %v2999_v49 }
 0x17e   :  { %2779 = vmatprep.subr.bf16.mxu1 %v3045_v31  ;;  %2644 = vmatprep.subr.bf16.mxu0 %v3000_v51 }
 0x180   :  { %1944 = vmatmul.mubr.bf16.vlgmr.msra.gmra.mrb[28].mxu0 %v1749_v50  ;;  %2776 = vmatmul.mubr.bf16.vlgmr.msra.gmra.mrb[36].mxu1 %v1749_v50 }
 0x181   :  { %2787 = vmatprep.mubr.msk.bf16.mxu1 %vm3046_vm1, %v3045_v31  ;;  %2645 = vmatpush3.bf16.msra.mxu0 %v3001_v52  ;;  %v1995_v52 = vld [vmem:[%s3796_s4] sm:$0x7] }
 0x182   :  { %2646 = vmatprep.subr.bf16.mxu0 %v3002_v53  ;;  %2780 = vmatpush3.bf16.msra.mxu1 %v3008_v28  ;;  %v2000_v53 = vrot.slane %v1995_v52, %v570_v60  ;;  %v2008_v28 = vrot.slane %v1995_v52, %v1120_v8 }
 0x183   :  { %2781 = vmatprep.subr.bf16.mxu1 %v3045_v31 }
 0x185   :  { %2647 = vmatpush3.bf16.msra.mxu0 %v3003_v62 }
 0x186   :  { %2648 = vmatprep.subr.bf16.mxu0 %v3004_v54  ;;  %2782 = vmatpush3.bf16.msra.mxu1 %v3011_v55  ;;  %v2004_v55 = vrot.slane %v1995_v52, %v631_v7 }
 0x187   :  { %2783 = vmatprep.subr.bf16.mxu1 %v3045_v31 }
 0x189   :  { %2649 = vmatpush3.bf16.msra.mxu0 %v3005_v56 }
 0x18a   :  { %2650 = vmatprep.subr.bf16.mxu0 %v3006_v57  ;;  %2784 = vmatpush3.bf16.msra.mxu1 %v3014_v5 }
 0x18b   :  { %2785 = vmatprep.subr.bf16.mxu1 %v3045_v31 }
 0x18d   :  { %2651 = vmatpush3.bf16.msra.mxu0 %v3007_v58 }
 0x18e   :  { %2652 = vmatprep.subr.bf16.mxu0 %v3009_v63  ;;  %2786 = vmatpush3.bf16.msra.mxu1 %v3017_v17  ;;  %v2574_v17 = vld [vmem:[%s3798_s6] ss:$0 sm:$0xff] }
 0x191   :  { %2653 = vmatpush3.bf16.msra.mxu0 %v3010_v0 }
 0x192   :  { %2654 = vmatprep.subr.bf16.mxu0 %v3012_v1 }
 0x195   :  { %2655 = vmatpush3.bf16.msra.mxu0 %v3013_v3 }
 0x196   :  { %2656 = vmatprep.subr.bf16.mxu0 %v3015_v10 }
 0x199   :  { %2657 = vmatpush3.bf16.msra.mxu0 %v3016_v14 }
 0x19a   :  { %2658 = vmatprep.subr.bf16.mxu0 %v3018_v48 }
 0x19d   :  { %2659 = vmatpush3.bf16.msra.mxu0 %v3019_v18 }
 0x1d3   :  { %v854_v4 = vpop.f32.mrb[12].mxu0  ;;  %v895_v26 = vpop.f32.mrb[20].mxu1 }
 0x1d4   :  { %v856_v6 = vpop.f32.mrb[13].mxu0  ;;  %v2697_v9 = vpop.f32.mrb[21].mxu1 }
 0x1d5   :  { %v858_v12 = vpop.f32.mrb[14].mxu0  ;;  %v898_v13 = vpop.f32.mrb[22].mxu1 }
 0x1d6   :  { %v859_v15 = vpop.f32.mrb[15].mxu0  ;;  %v2698_v16 = vpop.f32.mrb[23].mxu1 }
 0x1f3   :  { %v1063_v19 = vpop.f32.mrb[16].mxu0  ;;  %v1104_v20 = vpop.f32.mrb[24].mxu1 }
 0x1f4   :  { %v1064_v21 = vadd.f32 %v1063_v19, %v854_v4  ;;  %v1105_v31 = vadd.f32 %v1104_v20, %v895_v26  ;;  %v1065_v22 = vpop.f32.mrb[17].mxu0  ;;  %v2717_v23 = vpop.f32.mrb[25].mxu1 }
 0x1f5   :  { %v1066_v24 = vadd.f32 %v1065_v22, %v856_v6  ;;  %v1067_v25 = vpop.f32.mrb[18].mxu0  ;;  %v1107_v27 = vpop.f32.mrb[26].mxu1 }
 0x1f6   :  { %v1068_v29 = vpop.f32.mrb[19].mxu0  ;;  %v2718_v30 = vpop.f32.mrb[27].mxu1 }
 0x213   :  { %v1347_v32 = vpop.f32.mrb[20].mxu0  ;;  %v1388_v33 = vpop.f32.mrb[28].mxu1 }
 0x214   :  { %v1394_v11 = vadd.f32 %v1347_v32, %v1064_v21  ;;  %v1396_v34 = vadd.f32 %v1388_v33, %v1105_v31  ;;  %v1349_v35 = vpop.f32.mrb[21].mxu0  ;;  %v2737_v2 = vpop.f32.mrb[29].mxu1 }
 0x215   :  { %v1395_v36 = vadd.f32 %v1349_v35, %v1066_v24  ;;  %v1351_v37 = vpop.f32.mrb[22].mxu0  ;;  %v1391_v38 = vpop.f32.mrb[30].mxu1 }
 0x216   :  { %v1352_v39 = vpop.f32.mrb[23].mxu0  ;;  %v2738_v61 = vpop.f32.mrb[31].mxu1 }
 0x233   :  { %v1642_v40 = vpop.f32.mrb[24].mxu0  ;;  %v1683_v41 = vpop.f32.mrb[32].mxu1 }
 0x234   :  { %v1689_v42 = vadd.f32 %v1642_v40, %v1394_v11  ;;  %v1691_v43 = vadd.f32 %v1683_v41, %v1396_v34  ;;  %v1644_v44 = vpop.f32.mrb[25].mxu0  ;;  %v2757_v45 = vpop.f32.mrb[33].mxu1 }
 0x235   :  { %v1690_v46 = vadd.f32 %v1644_v44, %v1395_v36  ;;  %v1646_v47 = vpop.f32.mrb[26].mxu0  ;;  %v1686_v49 = vpop.f32.mrb[34].mxu1 }
 0x236   :  { %v1647_v50 = vpop.f32.mrb[27].mxu0  ;;  %v2758_v51 = vpop.f32.mrb[35].mxu1 }
 0x253   :  { %v1945_v62 = vpop.f32.mrb[28].mxu0  ;;  %v1986_v54 = vpop.f32.mrb[36].mxu1 }
 0x254   :  { %v1992_v56 = vadd.f32 %v1945_v62, %v1689_v42  ;;  %v1994_v57 = vadd.f32 %v1986_v54, %v1691_v43  ;;  %v1947_v58 = vpop.f32.mrb[29].mxu0  ;;  %v2777_v63 = vpop.f32.mrb[37].mxu1 }
 0x255   :  { %v1993_v0 = vadd.f32 %v1947_v58, %v1690_v46  ;;  %v1949_v1 = vpop.f32.mrb[30].mxu0  ;;  %v1989_v3 = vpop.f32.mrb[38].mxu1 }
 0x256   :  { %v2012_v4 = vadd.f32 %v2000_v53, %v1992_v56  ;;  %v2014_v26 = vadd.f32 %v2008_v28, %v1994_v57  ;;  %v1950_v5 = vpop.f32.mrb[31].mxu0  ;;  %v2778_v6 = vpop.f32.mrb[39].mxu1 }
 0x257   :  { %v2013_v60 = vadd.f32 %v2004_v55, %v1993_v0 }
 0x258   :  { %v2015_v9 = vmax.f32 %v2012_v4, 0.0  ;;  %v2017_v10 = vmax.f32 %v2014_v26, 0.0 }
 0x259   :  { %v2016_v8 = vmax.f32 %v2013_v60, 0.0 }
 0x25a   :  { %v2020_v12 = vpack.c.bf16 %v2017_v10, %v2017_v10  ;;  %v2018_v59 = vpack.c.bf16 %v2015_v9, %v2015_v9 }
 0x25b   :  { %v2019_v13 = vpack.c.bf16 %v2016_v8, %v2016_v8 }
 0x25c   :  { %2788 = vmatmul.mubr.msk.bf16.vlgmr.msra.gmra.mrb[40].mxu1 %vm2188_vm8, %v2020_v12 }
 0x25d   :  { %2224 = vmatprep.mubr.bf16.mxu0 %v2019_v13 }
 0x25e   :  { %2225 = vmatmul.mubr.bf16.vlgmr.msra.gmra.mrb[32].mxu0 %v2018_v59 }
 0x32f   :  { %v2266_v7 = vpop.f32.mrb[40].mxu1 }
 0x330   :  { %v2789_v14 = vpop.f32.mrb[41].mxu1 }
 0x331   :  { %v2660_v15 = vpop.f32.mrb[32].mxu0  ;;  %v2269_v16 = vpop.f32.mrb[42].mxu1 }
 0x332   :  { %v2661_v48 = vpop.f32.mrb[33].mxu0  ;;  %v2790_v18 = vpop.f32.mrb[43].mxu1 }
 0x333   :  { %v2662_v19 = vadd.f32 %v2661_v48, %v2660_v15  ;;  %v2663_v20 = vpop.f32.mrb[34].mxu0 }
 0x334   :  { %v2664_v21 = vpop.f32.mrb[35].mxu0 }
 0x335   :  { %v2227_v31 = vadd.f32 %v2662_v19, %v2574_v17 }
 0x337   :  { %v2267_v22 = vadd.f32 %v2266_v7, %v2227_v31 }
 0x339   :  { %2272 = vst [vmem:[#allocation2] sm:$0x3] %v2267_v22 }
 0x33a   :  { %3031 = shalt.err (!%p3028_p4)
}
 0x33b   :  { %s3032_s2 = scalar_lea.hbm %s3799_s7, 32 }
 0x33c   :  { %p3033_p5 = scmp.ne.s32.totalorder %s3799_s7, %s3032_s2  ;;  %p3036_p6 = scmp.lt.u32.totalorder %s3032_s2, %s3799_s7 }
 0x33e   :  { %p3038_p7 = pnand %p3036_p6, %p3033_p5 }
 0x340   :  { %3041 = shalt.err (!%p3038_p7)
}
 0x341   :  { %2282 = dma.vmem_to_hbm [thread:$0]  %s2280_s14, 32, %s3799_s7, [#allocation3]  }
 0x342   :  { %3042 = dma.done.wait [#allocation3], 32  }
 0x343   :  { %3043 = vsyncadd [#allocation3], 4294967264 }
 0x344   :  { %2286 = vsyncpa [#allocation3], 1 }

</bundles_post_ra>
